<compile_context>
chip_gen: v5e
topology: v5e:2x2
jax: 0.10.0
libtpu: 0.0.40
codegen_flags: <defaults>
</compile_context>

<pallas_src>
import functools

import jax
import jax.numpy as jnp
from jax.experimental import pallas as pl
from jax.experimental.pallas import tpu as pltpu


def _round_up(x, m):
    return (x + m - 1) // m * m


def _layer_norm(x, g, b, eps=1e-5):
    mu = jnp.mean(x, axis=-1, keepdims=True)
    var = jnp.mean((x - mu) ** 2, axis=-1, keepdims=True)
    return (x - mu) * jax.lax.rsqrt(var + eps) * g + b


# ----------------------------------------------------------------------------
# Kernel 1: fused ViT encoder.
#   grid = (batch_blocks, depth).  The residual stream (b_blk, n_pad, dim)
#   lives in the depth-invariant output block; per-layer weights are stacked
#   on a leading depth axis and indexed by the depth grid axis (weight DMA of
#   layer l+1 pipelines behind layer l).  Patch embedding + cls/pos add run in
#   the il == 0 branch.
# ----------------------------------------------------------------------------
def _vit_encoder_kernel(
    patches_ref, tok_bias_ref, w_patch_ref,
    ln1g, ln1b, w_qkv, w_out, b_out, ln2g, ln2b, w_ff1, b_ff1, w_ff2, b_ff2,
    o_ref, *, heads, dim_head, n_valid,
):
    il = pl.program_id(1)                      # depth index ("arbitrary" axis)
    b_blk, n_pad, dim = o_ref.shape
    m = b_blk * n_pad
    dh = dim_head
    bf16 = jnp.bfloat16
    f32 = jnp.float32

    @pl.when(il == 0)
    def _():
        # patch embedding + (cls token | pos embedding | patch bias) fused
        # into the first depth step; row 0 of `patches` is zero (cls slot),
        # padded token rows are zero.
        pf = patches_ref[...].reshape(m, patches_ref.shape[-1])      # bf16
        emb = jnp.dot(pf, w_patch_ref[...], preferred_element_type=f32)
        o_ref[...] = emb.reshape(b_blk, n_pad, dim) + tok_bias_ref[...]

    x = o_ref[...].reshape(m, dim)             # f32 residual stream

    # ---- attention block: x = x + to_out(attn(LN(x))) ----
    xn = _layer_norm(x, ln1g[...], ln1b[...])
    qkv = jnp.dot(xn.astype(bf16), w_qkv[...],
                  preferred_element_type=f32)                        # (m, 3*inner)

    # w_qkv columns are head-blocked ([q|k|v] per head, q pre-scaled by
    # dim_head**-0.5), so one contiguous lane slice per head + one major-axis
    # concat gives (heads*b_blk, n_pad, 3*dh).
    per_head = jnp.concatenate(
        [qkv[:, h * 3 * dh:(h + 1) * 3 * dh].reshape(b_blk, n_pad, 3 * dh)
         for h in range(heads)], axis=0)                             # (h*b, n, 3dh)
    q = per_head[..., 0 * dh:1 * dh].astype(bf16)
    k = per_head[..., 1 * dh:2 * dh].astype(bf16)
    v = per_head[..., 2 * dh:3 * dh].astype(bf16)

    dots = jnp.einsum("bqd,bkd->bqk", q, k,
                      preferred_element_type=f32)                    # f32 scores
    if n_valid < n_pad:  # static check: mask padded key tokens
        key_idx = jax.lax.broadcasted_iota(jnp.int32, (1, 1, n_pad), 2)
        dots = jnp.where(key_idx < n_valid, dots, -1e30)
    dots = dots - jnp.max(dots, axis=-1, keepdims=True)
    e = jnp.exp(dots)
    p = e * pl.reciprocal(jnp.sum(e, axis=-1, keepdims=True), approx=True)

    oh = jnp.einsum("bqk,bkd->bqd", p.astype(bf16), v,
                    preferred_element_type=f32)                      # (h*b, n, dh)
    oh = oh.reshape(heads, m, dh).astype(bf16)

    # output projection without a head concat: batched per-head matmul + sum.
    proj = jnp.einsum("hmd,hde->hme", oh, w_out[...],
                      preferred_element_type=f32)                    # (h, m, dim)
    x = x + jnp.sum(proj, axis=0) + b_out[...]

    # ---- feed-forward block: x = x + FFN(LN(x)) ----
    xn2 = _layer_norm(x, ln2g[...], ln2b[...])
    h1 = jnp.dot(xn2.astype(bf16), w_ff1[...],
                 preferred_element_type=f32) + b_ff1[...]
    # TODO(synk): PyTorch nn.GELU default is the exact (erf) form; using the
    # tanh approximation here for robust Mosaic lowering (~1e-3 divergence).
    h1 = jax.nn.gelu(h1, approximate=True)
    ff = jnp.dot(h1.astype(bf16), w_ff2[...],
                 preferred_element_type=f32) + b_ff2[...]

    o_ref[...] = (x + ff).reshape(b_blk, n_pad, dim)


def _vmem_limit_bytes(b_blk, n_pad, patch_dim, dim, inner, mlp_dim, heads):
    """Explicit scoped-VMEM budget: 2x (double-buffered) per-layer weights +
    resident residual/patch blocks + live intermediates, with headroom, capped
    to 75% of physical VMEM (v7x has only 64 MiB per TC)."""
    m = b_blk * n_pad
    w_layer = 2 * (dim * 3 * inner + inner * dim + dim * mlp_dim + mlp_dim * dim)
    b_layer = 4 * (6 * dim + mlp_dim)
    static_in = 2 * (m * patch_dim * 2 + patch_dim * dim * 2 + n_pad * dim * 4)
    resid = 2 * m * dim * 4
    live = 4 * (m * 3 * inner + 2 * heads * b_blk * n_pad * n_pad
                + m * mlp_dim + 3 * m * dim)
    need = int(1.5 * (2 * (w_layer + b_layer) + static_in + resid + live)) + (4 << 20)
    try:
        cap = int(pltpu.get_tpu_info().vmem_capacity_bytes)
    except Exception:  # pragma: no cover - conservative fallback
        cap = 64 << 20
    return max(min(need, int(cap * 0.75)), 32 << 20)


def transformer(patches, tok_bias, w_patch, lp, *, heads, dim_head, n_valid,
                num_batch_blocks=1):
    b, n_pad, patch_dim = patches.shape
    depth = lp["w_qkv"].shape[0]
    dim = lp["w_ff2"].shape[2]
    mlp_dim = lp["w_ff1"].shape[2]
    inner = heads * dim_head

    # Batch blocking: default is the whole batch in ONE block so per-layer
    # weights stream once per depth step.  On v7x use num_batch_blocks=2 so the
    # "parallel" batch axis shards across the two TensorCores.
    nb = max(1, min(num_batch_blocks, b))
    b_blk = -(-b // nb)
    b_pad = nb * b_blk
    if b_pad != b:
        patches = jnp.pad(patches, ((0, b_pad - b), (0, 0), (0, 0)))

    kernel = functools.partial(
        _vit_encoder_kernel, heads=heads, dim_head=dim_head, n_valid=n_valid)

    def wspec(*rest):
        # per-layer weight block: leading depth dim squeezed, indexed by depth axis
        nz = len(rest)
        return pl.BlockSpec((None,) + tuple(rest), lambda ib, il: (il,) + (0,) * nz)

    in_specs = [
        pl.BlockSpec((b_blk, n_pad, patch_dim), lambda ib, il: (ib, 0, 0)),  # patches
        pl.BlockSpec((1, n_pad, dim), lambda ib, il: (0, 0, 0)),             # cls/pos bias
        pl.BlockSpec((patch_dim, dim), lambda ib, il: (0, 0)),               # w_patch
        wspec(1, dim), wspec(1, dim),                                        # ln1 g/b
        wspec(dim, 3 * inner),                                               # w_qkv
        wspec(heads, dim_head, dim), wspec(1, dim),                          # w_out, b_out
        wspec(1, dim), wspec(1, dim),                                        # ln2 g/b
        wspec(dim, mlp_dim), wspec(1, mlp_dim),                              # w_ff1, b_ff1
        wspec(mlp_dim, dim), wspec(1, dim),                                  # w_ff2, b_ff2
    ]
    # TODO(synk): for real ViT sizes on v7x (64 MiB VMEM), additionally K-tile
    # w_ff1/w_ff2 over mlp_dim (inner pl.loop) instead of shrinking the token
    # block; int8/fp8 weights are a further option per generation.
    vmem = _vmem_limit_bytes(b_blk, n_pad, patch_dim, dim, inner, mlp_dim, heads)

    out = pl.pallas_call(
        kernel,
        grid=(nb, depth),
        in_specs=in_specs,
        # depth-invariant output block index -> residual stream stays VMEM-resident
        out_specs=pl.BlockSpec((b_blk, n_pad, dim), lambda ib, il: (ib, 0, 0)),
        out_shape=jax.ShapeDtypeStruct((b_pad, n_pad, dim), jnp.float32),
        compiler_params=pltpu.CompilerParams(
            dimension_semantics=("parallel", "arbitrary"),
            vmem_limit_bytes=vmem),
    )(
        patches, tok_bias, w_patch,
        lp["ln1_g"], lp["ln1_b"], lp["w_qkv"], lp["w_out"], lp["b_out"],
        lp["ln2_g"], lp["ln2_b"], lp["w_ff1"], lp["b_ff1"], lp["w_ff2"], lp["b_ff2"],
    )
    return out[:b]


# ----------------------------------------------------------------------------
# Kernel 2: fused VQ (nearest code + commitment loss, straight-through) plus
#           the three classification heads fused into one lane-dense matmul.
# ----------------------------------------------------------------------------
# TODO(synk): VectorQuantizerEMA source is not provided; implemented the
# standard VQ-VAE-EMA inference forward (nearest code, commitment_cost=0.25,
# straight-through). EMA codebook updates are training-only and are skipped.
def _vq_heads_kernel(x_ref, cbt_ref, cb_ref, cbsq_ref, wh_ref, bh_ref,
                     o_ref, loss_ref, *, num_codes):
    x = x_ref[...]                                                    # (b, dim) f32
    k_pad = cbt_ref.shape[1]

    # distances up to a per-row constant (|x|^2 term does not affect argmin)
    d = cbsq_ref[...] - 2.0 * jnp.dot(x, cbt_ref[...],
                                      preferred_element_type=jnp.float32)
    lane = jax.lax.broadcasted_iota(jnp.int32, (1, k_pad), 1)
    d = jnp.where(lane < num_codes, d, 1e30)                          # mask pad codes

    min_d = jnp.min(d, axis=-1, keepdims=True)
    idx = jnp.min(jnp.where(d <= min_d, lane, num_codes),
                  axis=-1, keepdims=True)                             # first argmin
    onehot = (lane == idx).astype(jnp.float32)                        # (b, K_pad)

    # codebook passed in (K_pad, dim) layout -> plain matmul, no transpose
    q = jnp.dot(onehot, cb_ref[...], preferred_element_type=jnp.float32)

    diff = q - x
    loss_ref[...] = 0.25 * jnp.mean(diff * diff, keepdims=True)       # (1, 1)

    # straight-through: forward value is the quantized code; heads fused into
    # one (dim, C_pad) bf16 matmul with a lane-dense (128-wide) store.
    o_ref[...] = (
        jnp.dot(q.astype(jnp.bfloat16), wh_ref[...],
                preferred_element_type=jnp.float32) + bh_ref[...]
    )


def vq_and_heads(pooled, params, *, num_codes, class_splits):
    b = pooled.shape[0]
    c_pad = params["w_heads"].shape[1]
    out, loss = pl.pallas_call(
        functools.partial(_vq_heads_kernel, num_codes=num_codes),
        out_shape=(
            jax.ShapeDtypeStruct((b, c_pad), jnp.float32),
            jax.ShapeDtypeStruct((1, 1), jnp.float32),
        ),
    )(pooled, params["codebook_t"], params["codebook"], params["codebook_sq"],
      params["w_heads"], params["b_heads"])
    c1, c2, c3 = class_splits
    return (out[:, :c1], out[:, c1:c1 + c2], out[:, c1 + c2:c1 + c2 + c3], loss)


# ----------------------------------------------------------------------------
# Full ViT forward (glue in JAX, compute in Pallas)
# ----------------------------------------------------------------------------
def vit_forward(img, params, *, patch_size, heads, dim_head, num_classes,
                num_codes=528, pool="cls", task="pred_gt", num_batch_blocks=1):
    b, c, H, W = img.shape
    p = patch_size
    h, w = H // p, W // p
    n = h * w
    dim = params["w_patch"].shape[1]
    n_tok = n + 1
    n_pad = _round_up(n_tok, 16)          # multiple of 16: full bf16 sublane packs

    # rearrange 'b c (h p1) (w p2) -> b (h w) (p1 p2 c)'   (pure data movement)
    x = img.reshape(b, c, h, p, w, p)
    x = jnp.transpose(x, (0, 2, 4, 3, 5, 1)).reshape(b, n, c * p * p)
    # row 0 reserved for the cls token; pad tokens to n_pad (masked in kernel)
    patches = jnp.pad(x.astype(jnp.bfloat16),
                      ((0, 0), (1, n_pad - n - 1), (0, 0)))

    # fused per-token bias: row0 = cls + pos[0]; rows 1..n = b_patch + pos[1..n]
    pos = params["pos_embedding"][0, :n_tok]
    row0 = params["cls_token"][0, 0] + pos[0]
    rows = params["b_patch"] + pos[1:]
    tok_bias = jnp.concatenate([row0[None], rows], axis=0)
    tok_bias = jnp.pad(tok_bias, ((0, n_pad - n_tok), (0, 0)))[None]  # (1, n_pad, dim)

    # fused patch-embed + transformer (all layers in one pipelined pallas_call)
    tokens = transformer(patches, tok_bias, params["w_patch"], params["layers"],
                         heads=heads, dim_head=dim_head, n_valid=n_tok,
                         num_batch_blocks=num_batch_blocks)
    tokens = tokens[:, :n_tok]

    # pool (+ emb/dropout = identity at p=0)
    pooled = jnp.mean(tokens, axis=1) if pool == "mean" else tokens[:, 0]

    # vector quantizer + heads
    # TODO(synk): 'task' only changes which head inputs are detach()ed
    # (gradient-only); forward values are identical, so it is unused here.
    pred_gt, pred_action, pred_time_ind, loss = vq_and_heads(
        pooled, params, num_codes=num_codes, class_splits=num_classes)
    return pred_gt, pred_action, pred_time_ind, loss[0, 0]


# ----------------------------------------------------------------------------
# Deterministic parameter init (synthetic weights, shapes from __init__)
# ----------------------------------------------------------------------------
def init_params(key, *, channels, patch_size, num_patches, dim, depth, heads,
                dim_head, mlp_dim, num_classes, num_codes=528):
    inner = heads * dim_head
    patch_dim = channels * patch_size * patch_size
    keys = iter(jax.random.split(key, 32))

    def rnd(shape, scale=0.02, dtype=jnp.float32):
        return (scale * jax.random.normal(next(keys), shape, jnp.float32)
                ).astype(dtype)

    k_pad = _round_up(num_codes, 128)
    c_total = sum(num_classes)
    c_pad = _round_up(c_total, 128)

    # codebook in both layouts + precomputed squared norms
    codebook = rnd((num_codes, dim), 1.0)
    codebook = jnp.pad(codebook, ((0, k_pad - num_codes), (0, 0)))    # (K_pad, dim)
    codebook_t = jnp.transpose(codebook)                              # (dim, K_pad)
    codebook_sq = jnp.sum(codebook * codebook, axis=1)[None]          # (1, K_pad)

    # fused class heads (lane-dense, 128-wide)
    w_heads = rnd((dim, c_total))
    w_heads = jnp.pad(w_heads, ((0, 0), (0, c_pad - c_total))).astype(jnp.bfloat16)
    b_heads = jnp.zeros((1, c_pad), jnp.float32)

    # qkv weights packed head-blocked ([q_h | k_h | v_h] per head) with the
    # attention scale folded into the q columns -- a pure offline
    # re-layout/re-scale of to_qkv.weight, mathematically identical forward.
    scale = dim_head ** -0.5
    wq = rnd((depth, dim, heads, dim_head)) * scale
    wk = rnd((depth, dim, heads, dim_head))
    wv = rnd((depth, dim, heads, dim_head))
    w_qkv = jnp.concatenate([wq, wk, wv], axis=-1).reshape(depth, dim, 3 * inner)
    w_qkv = w_qkv.astype(jnp.bfloat16)

    # TODO(synk): optional int8 (v5e/v6e) or fp8 (v7x) weight storage with
    # per-channel scales would further halve the weight HBM stream.
    params = {
        "w_patch": rnd((patch_dim, dim), dtype=jnp.bfloat16),
        "b_patch": jnp.zeros((dim,), jnp.float32),
        "cls_token": rnd((1, 1, dim), 1.0),
        "pos_embedding": rnd((1, num_patches + 1, dim), 1.0),
        "codebook": codebook,
        "codebook_t": codebook_t,
        "codebook_sq": codebook_sq,
        "w_heads": w_heads,
        "b_heads": b_heads,
        "layers": {  # per-layer params stacked on a leading depth axis
            "ln1_g": jnp.ones((depth, 1, dim), jnp.float32),
            "ln1_b": jnp.zeros((depth, 1, dim), jnp.float32),
            "w_qkv": w_qkv,
            "w_out": rnd((depth, heads, dim_head, dim), dtype=jnp.bfloat16),
            "b_out": jnp.zeros((depth, 1, dim), jnp.float32),
            "ln2_g": jnp.ones((depth, 1, dim), jnp.float32),
            "ln2_b": jnp.zeros((depth, 1, dim), jnp.float32),
            "w_ff1": rnd((depth, dim, mlp_dim), dtype=jnp.bfloat16),
            "b_ff1": jnp.zeros((depth, 1, mlp_dim), jnp.float32),
            "w_ff2": rnd((depth, mlp_dim, dim), dtype=jnp.bfloat16),
            "b_ff2": jnp.zeros((depth, 1, dim), jnp.float32),
        },
    }
    return params


if __name__ == "__main__":
    # small shapes consistent with the module
    B, C, IMG, PATCH = 2, 4, 16, 8
    DIM, DEPTH, HEADS, DIM_HEAD, MLP_DIM = 32, 2, 4, 8, 64
    NUM_CLASSES = (3, 4, 5)
    NUM_PATCHES = (IMG // PATCH) * (IMG // PATCH)

    key = jax.random.PRNGKey(0)
    k_param, k_img = jax.random.split(key)
    params = init_params(
        k_param, channels=C, patch_size=PATCH, num_patches=NUM_PATCHES,
        dim=DIM, depth=DEPTH, heads=HEADS, dim_head=DIM_HEAD, mlp_dim=MLP_DIM,
        num_classes=NUM_CLASSES, num_codes=528,
    )
    img = jax.random.normal(k_img, (B, C, IMG, IMG), jnp.float32)

    pred_gt, pred_action, pred_time_ind, loss = vit_forward(
        img, params, patch_size=PATCH, heads=HEADS, dim_head=DIM_HEAD,
        num_classes=NUM_CLASSES, num_codes=528, pool="cls", task="pred_gt",
        num_batch_blocks=1,   # set 2 on v7x (two TensorCores per chip)
    )
    jax.block_until_ready((pred_gt, pred_action, pred_time_ind, loss))
    assert pred_gt.shape == (B, NUM_CLASSES[0])
    assert pred_action.shape == (B, NUM_CLASSES[1])
    assert pred_time_ind.shape == (B, NUM_CLASSES[2])
    assert loss.shape == ()
    assert bool(jnp.all(jnp.isfinite(pred_gt))) and bool(jnp.isfinite(loss))
    print("KERNEL_OK")
</pallas_src>

<mosaic_0001>
module attributes {stable_mosaic.version = 11 : i64} {
  func.func @_vit_encoder_kernel(%arg0: i32, %arg1: i32, %arg2: memref<2x16x256xbf16, #tpu.memory_space<vmem>>, %arg3: memref<1x16x32xf32, #tpu.memory_space<vmem>>, %arg4: memref<256x32xbf16, #tpu.memory_space<vmem>>, %arg5: memref<1x1x32xf32, #tpu.memory_space<vmem>>, %arg6: memref<1x1x32xf32, #tpu.memory_space<vmem>>, %arg7: memref<1x32x96xbf16, #tpu.memory_space<vmem>>, %arg8: memref<1x4x8x32xbf16, #tpu.memory_space<vmem>>, %arg9: memref<1x1x32xf32, #tpu.memory_space<vmem>>, %arg10: memref<1x1x32xf32, #tpu.memory_space<vmem>>, %arg11: memref<1x1x32xf32, #tpu.memory_space<vmem>>, %arg12: memref<1x32x64xbf16, #tpu.memory_space<vmem>>, %arg13: memref<1x1x64xf32, #tpu.memory_space<vmem>>, %arg14: memref<1x64x32xbf16, #tpu.memory_space<vmem>>, %arg15: memref<1x1x32xf32, #tpu.memory_space<vmem>>, %arg16: memref<2x16x32xf32, #tpu.memory_space<vmem>>) attributes {dimension_semantics = [#tpu.dimension_semantics<parallel>, #tpu.dimension_semantics<arbitrary>], iteration_bounds = array<i64: 1, 2>, scalar_prefetch = 0 : i64, scratch_operands = 0 : i64, tpu.core_type = #tpu.core_type<tc>, window_params = [{transform_indices = @transform_0, window_bounds = array<i64: 2, 16, 256>}, {pipeline_mode = #tpu.pipeline_mode<synchronous>, transform_indices = @transform_1, window_bounds = array<i64: 1, 16, 32>}, {pipeline_mode = #tpu.pipeline_mode<synchronous>, transform_indices = @transform_2, window_bounds = array<i64: 256, 32>}, {transform_indices = @transform_3, window_bounds = array<i64: 1, 1, 32>}, {transform_indices = @transform_4, window_bounds = array<i64: 1, 1, 32>}, {transform_indices = @transform_5, window_bounds = array<i64: 1, 32, 96>}, {transform_indices = @transform_6, window_bounds = array<i64: 1, 4, 8, 32>}, {transform_indices = @transform_7, window_bounds = array<i64: 1, 1, 32>}, {transform_indices = @transform_8, window_bounds = array<i64: 1, 1, 32>}, {transform_indices = @transform_9, window_bounds = array<i64: 1, 1, 32>}, {transform_indices = @transform_10, window_bounds = array<i64: 1, 32, 64>}, {transform_indices = @transform_11, window_bounds = array<i64: 1, 1, 64>}, {transform_indices = @transform_12, window_bounds = array<i64: 1, 64, 32>}, {transform_indices = @transform_13, window_bounds = array<i64: 1, 1, 32>}, {transform_indices = @transform_14, window_bounds = array<i64: 2, 16, 32>}]} {
    %c0_i32 = arith.constant 0 : i32
    %0 = arith.cmpi eq, %arg1, %c0_i32 : i32
    %1 = arith.extui %0 : i1 to i32
    %c0_i32_0 = arith.constant 0 : i32
    %2 = arith.cmpi ne, %1, %c0_i32_0 : i32
    scf.if %2 {
      %c0_63 = arith.constant 0 : index
      %c0_64 = arith.constant 0 : index
      %c0_65 = arith.constant 0 : index
      %139 = vector.load %arg2[%c0_63, %c0_64, %c0_65] : memref<2x16x256xbf16, #tpu.memory_space<vmem>>, vector<2x16x256xbf16>
      %140 = vector.shape_cast %139 : vector<2x16x256xbf16> to vector<32x256xbf16>
      %c0_66 = arith.constant 0 : index
      %c0_67 = arith.constant 0 : index
      %141 = vector.load %arg4[%c0_66, %c0_67] : memref<256x32xbf16, #tpu.memory_space<vmem>>, vector<256x32xbf16>
      %cst_68 = arith.constant dense<0.000000e+00> : vector<32x32xf32>
      %142 = tpu.matmul %140, %141, %cst_68 {dimension_numbers = #tpu.dot_dimension_numbers<[1], [0], [0], [1], [0, 0, 1, 1], [], []>} : vector<32x256xbf16>, vector<256x32xbf16>, vector<32x32xf32> -> vector<32x32xf32>
      %143 = vector.shape_cast %142 : vector<32x32xf32> to vector<2x16x32xf32>
      %c0_69 = arith.constant 0 : index
      %c0_70 = arith.constant 0 : index
      %c0_71 = arith.constant 0 : index
      %144 = vector.load %arg3[%c0_69, %c0_70, %c0_71] : memref<1x16x32xf32, #tpu.memory_space<vmem>>, vector<1x16x32xf32>
      %145 = vector.broadcast %144 : vector<1x16x32xf32> to vector<2x16x32xf32>
      %146 = arith.addf %143, %145 : vector<2x16x32xf32>
      %c0_72 = arith.constant 0 : index
      %c0_73 = arith.constant 0 : index
      %c0_74 = arith.constant 0 : index
      %147 = vector.load %arg16[%c0_72, %c0_73, %c0_74] : memref<2x16x32xf32, #tpu.memory_space<vmem>>, vector<2x16x32xf32>
      tpu.vector_store %arg16[%c0_72, %c0_73, %c0_74], %146 {strides = array<i32>} : memref<2x16x32xf32, #tpu.memory_space<vmem>>, vector<2x16x32xf32>,
    } else {
    }
    %c0 = arith.constant 0 : index
    %c0_1 = arith.constant 0 : index
    %c0_2 = arith.constant 0 : index
    %3 = vector.load %arg16[%c0, %c0_1, %c0_2] : memref<2x16x32xf32, #tpu.memory_space<vmem>>, vector<2x16x32xf32>
    %4 = vector.shape_cast %3 : vector<2x16x32xf32> to vector<32x32xf32>
    %c0_3 = arith.constant 0 : index
    %c0_4 = arith.constant 0 : index
    %c0_5 = arith.constant 0 : index
    %5 = vector.load %arg5[%c0_3, %c0_4, %c0_5] : memref<1x1x32xf32, #tpu.memory_space<vmem>>, vector<1x1x32xf32>
    %6 = vector.shape_cast %5 : vector<1x1x32xf32> to vector<1x32xf32>
    %c0_6 = arith.constant 0 : index
    %c0_7 = arith.constant 0 : index
    %c0_8 = arith.constant 0 : index
    %7 = vector.load %arg6[%c0_6, %c0_7, %c0_8] : memref<1x1x32xf32, #tpu.memory_space<vmem>>, vector<1x1x32xf32>
    %8 = vector.shape_cast %7 : vector<1x1x32xf32> to vector<1x32xf32>
    %cst = arith.constant dense<0.000000e+00> : vector<32xf32>
    %9 = vector.multi_reduction <add>, %4, %cst [1] : vector<32x32xf32> to vector<32xf32>
    %10 = vector.shape_cast %9 : vector<32xf32> to vector<32x1xf32>
    %cst_9 = arith.constant 3.200000e+01 : f32
    %11 = vector.broadcast %cst_9 : f32 to vector<32x1xf32>
    %12 = arith.divf %10, %11 : vector<32x1xf32>
    %13 = vector.broadcast %12 : vector<32x1xf32> to vector<32x32xf32>
    %14 = arith.subf %4, %13 : vector<32x32xf32>
    %15 = arith.mulf %14, %14 : vector<32x32xf32>
    %cst_10 = arith.constant dense<0.000000e+00> : vector<32xf32>
    %16 = vector.multi_reduction <add>, %15, %cst_10 [1] : vector<32x32xf32> to vector<32xf32>
    %17 = vector.shape_cast %16 : vector<32xf32> to vector<32x1xf32>
    %cst_11 = arith.constant 3.200000e+01 : f32
    %18 = vector.broadcast %cst_11 : f32 to vector<32x1xf32>
    %19 = arith.divf %17, %18 : vector<32x1xf32>
    %20 = vector.broadcast %12 : vector<32x1xf32> to vector<32x32xf32>
    %21 = arith.subf %4, %20 : vector<32x32xf32>
    %cst_12 = arith.constant 9.99999974E-6 : f32
    %22 = vector.broadcast %cst_12 : f32 to vector<32x1xf32>
    %23 = arith.addf %19, %22 : vector<32x1xf32>
    %24 = math.rsqrt %23 : vector<32x1xf32>
    %25 = vector.broadcast %24 : vector<32x1xf32> to vector<32x32xf32>
    %26 = arith.mulf %21, %25 : vector<32x32xf32>
    %27 = vector.broadcast %6 : vector<1x32xf32> to vector<32x32xf32>
    %28 = arith.mulf %26, %27 : vector<32x32xf32>
    %29 = vector.broadcast %8 : vector<1x32xf32> to vector<32x32xf32>
    %30 = arith.addf %28, %29 : vector<32x32xf32>
    %31 = arith.truncf %30 : vector<32x32xf32> to vector<32x32xbf16>
    %c0_13 = arith.constant 0 : index
    %c0_14 = arith.constant 0 : index
    %c0_15 = arith.constant 0 : index
    %32 = vector.load %arg7[%c0_13, %c0_14, %c0_15] : memref<1x32x96xbf16, #tpu.memory_space<vmem>>, vector<1x32x96xbf16>
    %33 = vector.shape_cast %32 : vector<1x32x96xbf16> to vector<32x96xbf16>
    %cst_16 = arith.constant dense<0.000000e+00> : vector<32x96xf32>
    %34 = tpu.matmul %31, %33, %cst_16 {dimension_numbers = #tpu.dot_dimension_numbers<[1], [0], [0], [1], [0, 0, 1, 1], [], []>} : vector<32x32xbf16>, vector<32x96xbf16>, vector<32x96xf32> -> vector<32x96xf32>
    %35 = vector.extract_strided_slice %34 {offsets = [0, 0], sizes = [32, 24], strides = [1, 1]} : vector<32x96xf32> to vector<32x24xf32>
    %36 = vector.shape_cast %35 : vector<32x24xf32> to vector<2x16x24xf32>
    %37 = vector.extract_strided_slice %34 {offsets = [0, 24], sizes = [32, 24], strides = [1, 1]} : vector<32x96xf32> to vector<32x24xf32>
    %38 = vector.shape_cast %37 : vector<32x24xf32> to vector<2x16x24xf32>
    %39 = vector.extract_strided_slice %34 {offsets = [0, 48], sizes = [32, 24], strides = [1, 1]} : vector<32x96xf32> to vector<32x24xf32>
    %40 = vector.shape_cast %39 : vector<32x24xf32> to vector<2x16x24xf32>
    %41 = vector.extract_strided_slice %34 {offsets = [0, 72], sizes = [32, 24], strides = [1, 1]} : vector<32x96xf32> to vector<32x24xf32>
    %42 = vector.shape_cast %41 : vector<32x24xf32> to vector<2x16x24xf32>
    %43 = tpu.concatenate %36, %38, %40, %42 in 0 : vector<2x16x24xf32>, vector<2x16x24xf32>, vector<2x16x24xf32>, vector<2x16x24xf32> -> vector<8x16x24xf32>
    %44 = vector.extract_strided_slice %43 {offsets = [0, 0, 0], sizes = [8, 16, 8], strides = [1, 1, 1]} : vector<8x16x24xf32> to vector<8x16x8xf32>
    %45 = arith.truncf %44 : vector<8x16x8xf32> to vector<8x16x8xbf16>
    %46 = vector.extract_strided_slice %43 {offsets = [0, 0, 8], sizes = [8, 16, 8], strides = [1, 1, 1]} : vector<8x16x24xf32> to vector<8x16x8xf32>
    %47 = arith.truncf %46 : vector<8x16x8xf32> to vector<8x16x8xbf16>
    %48 = vector.extract_strided_slice %43 {offsets = [0, 0, 16], sizes = [8, 16, 8], strides = [1, 1, 1]} : vector<8x16x24xf32> to vector<8x16x8xf32>
    %49 = arith.truncf %48 : vector<8x16x8xf32> to vector<8x16x8xbf16>
    "tpu.trace_start"() <{level = 10 : i32, message = "bqd,bkd->bqk"}> : () -> ()
    %cst_17 = arith.constant dense<0.000000e+00> : vector<8x16x16xf32>
    %50 = tpu.matmul %45, %47, %cst_17 {dimension_numbers = #tpu.dot_dimension_numbers<[2], [2], [1], [1], [0, 0, 0, 1, 1, 1], [0], [0]>} : vector<8x16x8xbf16>, vector<8x16x8xbf16>, vector<8x16x16xf32> -> vector<8x16x16xf32>
    "tpu.trace_stop"() : () -> ()
    %51 = tpu.iota {dimensions = array<i32: 2>} : vector<1x1x16xi32>
    %c5_i32 = arith.constant 5 : i32
    %52 = vector.broadcast %c5_i32 : i32 to vector<1x1x16xi32>
    %53 = arith.cmpi slt, %51, %52 : vector<1x1x16xi32>
    %cst_18 = arith.constant -1.000000e+30 : f32
    %54 = vector.shape_cast %53 : vector<1x1x16xi1> to vector<1x1x16xi1>
    %55 = vector.broadcast %54 : vector<1x1x16xi1> to vector<8x16x16xi1>
    %56 = vector.broadcast %cst_18 : f32 to vector<8x16x16xf32>
    %57 = arith.select %55, %50, %56 : vector<8x16x16xi1>, vector<8x16x16xf32>
    %cst_19 = arith.constant dense<0xFF800000> : vector<8x16xf32>
    %58 = vector.multi_reduction <maximumf>, %57, %cst_19 [2] : vector<8x16x16xf32> to vector<8x16xf32>
    %59 = vector.shape_cast %58 : vector<8x16xf32> to vector<8x16x1xf32>
    %60 = vector.broadcast %59 : vector<8x16x1xf32> to vector<8x16x16xf32>
    %61 = arith.subf %57, %60 : vector<8x16x16xf32>
    %62 = math.exp %61 : vector<8x16x16xf32>
    %cst_20 = arith.constant dense<0.000000e+00> : vector<8x16xf32>
    %63 = vector.multi_reduction <add>, %62, %cst_20 [2] : vector<8x16x16xf32> to vector<8x16xf32>
    %64 = vector.shape_cast %63 : vector<8x16xf32> to vector<8x16x1xf32>
    %65 = tpu.reciprocal %64 {approx = true} : vector<8x16x1xf32> -> vector<8x16x1xf32>
    %66 = vector.broadcast %65 : vector<8x16x1xf32> to vector<8x16x16xf32>
    %67 = arith.mulf %62, %66 : vector<8x16x16xf32>
    %68 = arith.truncf %67 : vector<8x16x16xf32> to vector<8x16x16xbf16>
    "tpu.trace_start"() <{level = 10 : i32, message = "bqk,bkd->bqd"}> : () -> ()
    %cst_21 = arith.constant dense<0.000000e+00> : vector<8x16x8xf32>
    %69 = tpu.matmul %68, %49, %cst_21 {dimension_numbers = #tpu.dot_dimension_numbers<[2], [1], [1], [2], [0, 0, 0, 1, 1, 2], [0], [0]>} : vector<8x16x16xbf16>, vector<8x16x8xbf16>, vector<8x16x8xf32> -> vector<8x16x8xf32>
    "tpu.trace_stop"() : () -> ()
    %70 = vector.shape_cast %69 : vector<8x16x8xf32> to vector<4x32x8xf32>
    %71 = arith.truncf %70 : vector<4x32x8xf32> to vector<4x32x8xbf16>
    %c0_22 = arith.constant 0 : index
    %c0_23 = arith.constant 0 : index
    %c0_24 = arith.constant 0 : index
    %c0_25 = arith.constant 0 : index
    %72 = vector.load %arg8[%c0_22, %c0_23, %c0_24, %c0_25] : memref<1x4x8x32xbf16, #tpu.memory_space<vmem>>, vector<1x4x8x32xbf16>
    %73 = vector.shape_cast %72 : vector<1x4x8x32xbf16> to vector<4x8x32xbf16>
    "tpu.trace_start"() <{level = 10 : i32, message = "hmd,hde->hme"}> : () -> ()
    %cst_26 = arith.constant dense<0.000000e+00> : vector<4x32x32xf32>
    %74 = tpu.matmul %71, %73, %cst_26 {dimension_numbers = #tpu.dot_dimension_numbers<[2], [1], [1], [2], [0, 0, 0, 1, 1, 2], [0], [0]>} : vector<4x32x8xbf16>, vector<4x8x32xbf16>, vector<4x32x32xf32> -> vector<4x32x32xf32>
    "tpu.trace_stop"() : () -> ()
    %cst_27 = arith.constant dense<0.000000e+00> : vector<32x32xf32>
    %75 = vector.multi_reduction <add>, %74, %cst_27 [0] : vector<4x32x32xf32> to vector<32x32xf32>
    %76 = arith.addf %4, %75 : vector<32x32xf32>
    %c0_28 = arith.constant 0 : index
    %c0_29 = arith.constant 0 : index
    %c0_30 = arith.constant 0 : index
    %77 = vector.load %arg9[%c0_28, %c0_29, %c0_30] : memref<1x1x32xf32, #tpu.memory_space<vmem>>, vector<1x1x32xf32>
    %78 = vector.shape_cast %77 : vector<1x1x32xf32> to vector<1x32xf32>
    %79 = vector.broadcast %78 : vector<1x32xf32> to vector<32x32xf32>
    %80 = arith.addf %76, %79 : vector<32x32xf32>
    %c0_31 = arith.constant 0 : index
    %c0_32 = arith.constant 0 : index
    %c0_33 = arith.constant 0 : index
    %81 = vector.load %arg10[%c0_31, %c0_32, %c0_33] : memref<1x1x32xf32, #tpu.memory_space<vmem>>, vector<1x1x32xf32>
    %82 = vector.shape_cast %81 : vector<1x1x32xf32> to vector<1x32xf32>
    %c0_34 = arith.constant 0 : index
    %c0_35 = arith.constant 0 : index
    %c0_36 = arith.constant 0 : index
    %83 = vector.load %arg11[%c0_34, %c0_35, %c0_36] : memref<1x1x32xf32, #tpu.memory_space<vmem>>, vector<1x1x32xf32>
    %84 = vector.shape_cast %83 : vector<1x1x32xf32> to vector<1x32xf32>
    %cst_37 = arith.constant dense<0.000000e+00> : vector<32xf32>
    %85 = vector.multi_reduction <add>, %80, %cst_37 [1] : vector<32x32xf32> to vector<32xf32>
    %86 = vector.shape_cast %85 : vector<32xf32> to vector<32x1xf32>
    %cst_38 = arith.constant 3.200000e+01 : f32
    %87 = vector.broadcast %cst_38 : f32 to vector<32x1xf32>
    %88 = arith.divf %86, %87 : vector<32x1xf32>
    %89 = vector.broadcast %88 : vector<32x1xf32> to vector<32x32xf32>
    %90 = arith.subf %80, %89 : vector<32x32xf32>
    %91 = arith.mulf %90, %90 : vector<32x32xf32>
    %cst_39 = arith.constant dense<0.000000e+00> : vector<32xf32>
    %92 = vector.multi_reduction <add>, %91, %cst_39 [1] : vector<32x32xf32> to vector<32xf32>
    %93 = vector.shape_cast %92 : vector<32xf32> to vector<32x1xf32>
    %cst_40 = arith.constant 3.200000e+01 : f32
    %94 = vector.broadcast %cst_40 : f32 to vector<32x1xf32>
    %95 = arith.divf %93, %94 : vector<32x1xf32>
    %96 = vector.broadcast %88 : vector<32x1xf32> to vector<32x32xf32>
    %97 = arith.subf %80, %96 : vector<32x32xf32>
    %cst_41 = arith.constant 9.99999974E-6 : f32
    %98 = vector.broadcast %cst_41 : f32 to vector<32x1xf32>
    %99 = arith.addf %95, %98 : vector<32x1xf32>
    %100 = math.rsqrt %99 : vector<32x1xf32>
    %101 = vector.broadcast %100 : vector<32x1xf32> to vector<32x32xf32>
    %102 = arith.mulf %97, %101 : vector<32x32xf32>
    %103 = vector.broadcast %82 : vector<1x32xf32> to vector<32x32xf32>
    %104 = arith.mulf %102, %103 : vector<32x32xf32>
    %105 = vector.broadcast %84 : vector<1x32xf32> to vector<32x32xf32>
    %106 = arith.addf %104, %105 : vector<32x32xf32>
    %107 = arith.truncf %106 : vector<32x32xf32> to vector<32x32xbf16>
    %c0_42 = arith.constant 0 : index
    %c0_43 = arith.constant 0 : index
    %c0_44 = arith.constant 0 : index
    %108 = vector.load %arg12[%c0_42, %c0_43, %c0_44] : memref<1x32x64xbf16, #tpu.memory_space<vmem>>, vector<1x32x64xbf16>
    %109 = vector.shape_cast %108 : vector<1x32x64xbf16> to vector<32x64xbf16>
    %cst_45 = arith.constant dense<0.000000e+00> : vector<32x64xf32>
    %110 = tpu.matmul %107, %109, %cst_45 {dimension_numbers = #tpu.dot_dimension_numbers<[1], [0], [0], [1], [0, 0, 1, 1], [], []>} : vector<32x32xbf16>, vector<32x64xbf16>, vector<32x64xf32> -> vector<32x64xf32>
    %c0_46 = arith.constant 0 : index
    %c0_47 = arith.constant 0 : index
    %c0_48 = arith.constant 0 : index
    %111 = vector.load %arg13[%c0_46, %c0_47, %c0_48] : memref<1x1x64xf32, #tpu.memory_space<vmem>>, vector<1x1x64xf32>
    %112 = vector.shape_cast %111 : vector<1x1x64xf32> to vector<1x64xf32>
    %113 = vector.broadcast %112 : vector<1x64xf32> to vector<32x64xf32>
    %114 = arith.addf %110, %113 : vector<32x64xf32>
    %115 = arith.mulf %114, %114 : vector<32x64xf32>
    %116 = arith.mulf %114, %115 : vector<32x64xf32>
    %cst_49 = arith.constant 4.471500e-02 : f32
    %117 = vector.broadcast %cst_49 : f32 to vector<32x64xf32>
    %118 = arith.mulf %117, %116 : vector<32x64xf32>
    %119 = arith.addf %114, %118 : vector<32x64xf32>
    %cst_50 = arith.constant 0.797884583 : f32
    %120 = vector.broadcast %cst_50 : f32 to vector<32x64xf32>
    %121 = arith.mulf %120, %119 : vector<32x64xf32>
    %122 = math.tanh %121 : vector<32x64xf32>
    %cst_51 = arith.constant 1.000000e+00 : f32
    %123 = vector.broadcast %cst_51 : f32 to vector<32x64xf32>
    %124 = arith.addf %123, %122 : vector<32x64xf32>
    %cst_52 = arith.constant 5.000000e-01 : f32
    %125 = vector.broadcast %cst_52 : f32 to vector<32x64xf32>
    %126 = arith.mulf %125, %124 : vector<32x64xf32>
    %127 = arith.mulf %114, %126 : vector<32x64xf32>
    %128 = arith.truncf %127 : vector<32x64xf32> to vector<32x64xbf16>
    %c0_53 = arith.constant 0 : index
    %c0_54 = arith.constant 0 : index
    %c0_55 = arith.constant 0 : index
    %129 = vector.load %arg14[%c0_53, %c0_54, %c0_55] : memref<1x64x32xbf16, #tpu.memory_space<vmem>>, vector<1x64x32xbf16>
    %130 = vector.shape_cast %129 : vector<1x64x32xbf16> to vector<64x32xbf16>
    %cst_56 = arith.constant dense<0.000000e+00> : vector<32x32xf32>
    %131 = tpu.matmul %128, %130, %cst_56 {dimension_numbers = #tpu.dot_dimension_numbers<[1], [0], [0], [1], [0, 0, 1, 1], [], []>} : vector<32x64xbf16>, vector<64x32xbf16>, vector<32x32xf32> -> vector<32x32xf32>
    %c0_57 = arith.constant 0 : index
    %c0_58 = arith.constant 0 : index
    %c0_59 = arith.constant 0 : index
    %132 = vector.load %arg15[%c0_57, %c0_58, %c0_59] : memref<1x1x32xf32, #tpu.memory_space<vmem>>, vector<1x1x32xf32>
    %133 = vector.shape_cast %132 : vector<1x1x32xf32> to vector<1x32xf32>
    %134 = vector.broadcast %133 : vector<1x32xf32> to vector<32x32xf32>
    %135 = arith.addf %131, %134 : vector<32x32xf32>
    %136 = arith.addf %80, %135 : vector<32x32xf32>
    %137 = vector.shape_cast %136 : vector<32x32xf32> to vector<2x16x32xf32>
    %c0_60 = arith.constant 0 : index
    %c0_61 = arith.constant 0 : index
    %c0_62 = arith.constant 0 : index
    %138 = vector.load %arg16[%c0_60, %c0_61, %c0_62] : memref<2x16x32xf32, #tpu.memory_space<vmem>>, vector<2x16x32xf32>
    tpu.vector_store %arg16[%c0_60, %c0_61, %c0_62], %137 {strides = array<i32>} : memref<2x16x32xf32, #tpu.memory_space<vmem>>, vector<2x16x32xf32>,
    return
  }
  func.func @transform_0(%arg0: i32, %arg1: i32) -> (i32, i32, i32) {
    %c0_i32 = arith.constant 0 : i32
    %c0_i32_0 = arith.constant 0 : i32
    %c0_i32_1 = arith.constant 0 : i32
    return %arg0, %c0_i32, %c0_i32_0 : i32, i32, i32
  }
  func.func @transform_1(%arg0: i32, %arg1: i32) -> (i32, i32, i32) {
    %c0_i32 = arith.constant 0 : i32
    %c0_i32_0 = arith.constant 0 : i32
    %c0_i32_1 = arith.constant 0 : i32
    %c0_i32_2 = arith.constant 0 : i32
    return %c0_i32, %c0_i32_0, %c0_i32_1 : i32, i32, i32
  }
  func.func @transform_2(%arg0: i32, %arg1: i32) -> (i32, i32) {
    %c0_i32 = arith.constant 0 : i32
    %c0_i32_0 = arith.constant 0 : i32
    %c0_i32_1 = arith.constant 0 : i32
    return %c0_i32, %c0_i32_0 : i32, i32
  }
  func.func @transform_3(%arg0: i32, %arg1: i32) -> (i32, i32, i32) {
    %c0_i32 = arith.constant 0 : i32
    %c0_i32_0 = arith.constant 0 : i32
    %c0_i32_1 = arith.constant 0 : i32
    return %arg1, %c0_i32, %c0_i32_0 : i32, i32, i32
  }
  func.func @transform_4(%arg0: i32, %arg1: i32) -> (i32, i32, i32) {
    %c0_i32 = arith.constant 0 : i32
    %c0_i32_0 = arith.constant 0 : i32
    %c0_i32_1 = arith.constant 0 : i32
    return %arg1, %c0_i32, %c0_i32_0 : i32, i32, i32
  }
  func.func @transform_5(%arg0: i32, %arg1: i32) -> (i32, i32, i32) {
    %c0_i32 = arith.constant 0 : i32
    %c0_i32_0 = arith.constant 0 : i32
    %c0_i32_1 = arith.constant 0 : i32
    return %arg1, %c0_i32, %c0_i32_0 : i32, i32, i32
  }
  func.func @transform_6(%arg0: i32, %arg1: i32) -> (i32, i32, i32, i32) {
    %c0_i32 = arith.constant 0 : i32
    %c0_i32_0 = arith.constant 0 : i32
    %c0_i32_1 = arith.constant 0 : i32
    %c0_i32_2 = arith.constant 0 : i32
    return %arg1, %c0_i32, %c0_i32_0, %c0_i32_1 : i32, i32, i32, i32
  }
  func.func @transform_7(%arg0: i32, %arg1: i32) -> (i32, i32, i32) {
    %c0_i32 = arith.constant 0 : i32
    %c0_i32_0 = arith.constant 0 : i32
    %c0_i32_1 = arith.constant 0 : i32
    return %arg1, %c0_i32, %c0_i32_0 : i32, i32, i32
  }
  func.func @transform_8(%arg0: i32, %arg1: i32) -> (i32, i32, i32) {
    %c0_i32 = arith.constant 0 : i32
    %c0_i32_0 = arith.constant 0 : i32
    %c0_i32_1 = arith.constant 0 : i32
    return %arg1, %c0_i32, %c0_i32_0 : i32, i32, i32
  }
  func.func @transform_9(%arg0: i32, %arg1: i32) -> (i32, i32, i32) {
    %c0_i32 = arith.constant 0 : i32
    %c0_i32_0 = arith.constant 0 : i32
    %c0_i32_1 = arith.constant 0 : i32
    return %arg1, %c0_i32, %c0_i32_0 : i32, i32, i32
  }
  func.func @transform_10(%arg0: i32, %arg1: i32) -> (i32, i32, i32) {
    %c0_i32 = arith.constant 0 : i32
    %c0_i32_0 = arith.constant 0 : i32
    %c0_i32_1 = arith.constant 0 : i32
    return %arg1, %c0_i32, %c0_i32_0 : i32, i32, i32
  }
  func.func @transform_11(%arg0: i32, %arg1: i32) -> (i32, i32, i32) {
    %c0_i32 = arith.constant 0 : i32
    %c0_i32_0 = arith.constant 0 : i32
    %c0_i32_1 = arith.constant 0 : i32
    return %arg1, %c0_i32, %c0_i32_0 : i32, i32, i32
  }
  func.func @transform_12(%arg0: i32, %arg1: i32) -> (i32, i32, i32) {
    %c0_i32 = arith.constant 0 : i32
    %c0_i32_0 = arith.constant 0 : i32
    %c0_i32_1 = arith.constant 0 : i32
    return %arg1, %c0_i32, %c0_i32_0 : i32, i32, i32
  }
  func.func @transform_13(%arg0: i32, %arg1: i32) -> (i32, i32, i32) {
    %c0_i32 = arith.constant 0 : i32
    %c0_i32_0 = arith.constant 0 : i32
    %c0_i32_1 = arith.constant 0 : i32
    return %arg1, %c0_i32, %c0_i32_0 : i32, i32, i32
  }
  func.func @transform_14(%arg0: i32, %arg1: i32) -> (i32, i32, i32) {
    %c0_i32 = arith.constant 0 : i32
    %c0_i32_0 = arith.constant 0 : i32
    %c0_i32_1 = arith.constant 0 : i32
    return %arg0, %c0_i32, %c0_i32_0 : i32, i32, i32
  }
}

</mosaic_0001>

<bundles_post_ra>
// kernel: tpu_custom_call.1
= control target key start
LH: loop header
LB: loop body
LE: loop exit
PB: predicated region body
PF: predicated region fallthrough
CT: control target
= control target key end

     0   :  { %s3455_s0 = inlined_call_operand.vmem [shape: bf16[2,16,256], index: 0, kind: input, shape index: {}]   ;;  %s3456_s1 = inlined_call_operand.vmem [shape: f32[1,16,32], index: 1, kind: input, shape index: {}]   ;;  %s3457_s2 = inlined_call_operand.vmem [shape: bf16[256,32], index: 2, kind: input, shape index: {}]   ;;  %s3458_s3 = inlined_call_operand.vmem [shape: f32[2,1,32], index: 3, kind: input, shape index: {}]   ;;  %s3459_s4 = inlined_call_operand.vmem [shape: f32[2,1,32], index: 4, kind: input, shape index: {}]   ;;  %s3460_s5 = inlined_call_operand.vmem [shape: bf16[2,32,96], index: 5, kind: input, shape index: {}]   ;;  %s3461_s6 = inlined_call_operand.vmem [shape: bf16[2,4,8,32], index: 6, kind: input, shape index: {}]   ;;  %s3462_s7 = inlined_call_operand.vmem [shape: f32[2,1,32], index: 7, kind: input, shape index: {}]   ;;  %s3463_s8 = inlined_call_operand.vmem [shape: f32[2,1,32], index: 8, kind: input, shape index: {}]   ;;  %s3464_s9 = inlined_call_operand.vmem [shape: f32[2,1,32], index: 9, kind: input, shape index: {}]   ;;  %s3465_s10 = inlined_call_operand.vmem [shape: bf16[2,32,64], index: 10, kind: input, shape index: {}]   ;;  %s3466_s11 = inlined_call_operand.vmem [shape: f32[2,1,64], index: 11, kind: input, shape index: {}]   ;;  %s3467_s12 = inlined_call_operand.vmem [shape: bf16[2,64,32], index: 12, kind: input, shape index: {}]   ;;  %s3468_s13 = inlined_call_operand.vmem [shape: f32[2,1,32], index: 13, kind: input, shape index: {}]   ;;  %s3469_s14 = inlined_call_operand.hbm [shape: f32[2,16,32], index: 14, kind: output, shape index: {}]  }
   0x1   :  { %3472 = sst [smem:[#allocation8_spill]] %s3459_s4 }
   0x2   :  { %3473 = sst [smem:[#allocation9_spill]] %s3460_s5 }
   0x3   :  { %3474 = sst [smem:[#allocation10_spill]] %s3461_s6 }
   0x4   :  { %3475 = sst [smem:[#allocation11_spill]] %s3462_s7 }
   0x5   :  { %3476 = sst [smem:[#allocation12_spill]] %s3469_s14 }
   0x6   :  { %19 = vsyncpa [#allocation3], 0  ;;  %s2876_s29 = smov 0   ;;  %s2878_s30 = smov 0  }
   0x7   :  { %s2880_s15 = smov 0  }
   0x8 LB: > { %3477 = sst [smem:[#allocation5_spill]] %s2786_s30  ;;  %s34_s17 = sadd.s32 1, %s2786_s30  ;;  %s2790_s15 = sphi %s2880_s15, %s25_s15   ;;  %s2786_s30 = sphi %s2878_s30, %s3495_s30   ;;  %s2782_s29 = sphi %s2876_s29, %s3494_s29  }
   0x9   : > { %3478 = sst [smem:[#allocation6_spill]] %s2790_s15  ;;  %p35_p0 = scmp.ge.s32.totalorder %s34_s17, 2 }
   0xa   : > { %p2362_p1 = scmp.ge.s32.totalorder %s2790_s15, 1  ;;  %p523_p2 = scmp.lt.s32.totalorder %s2790_s15, 3 }
   0xb   : > { %s3497_s17 = smov (%p35_p0, %s34_s17), 0 }
   0xc   : > { %3479 = sst [smem:[#allocation7_spill]] %s3497_s17  ;;  %p524_p3 = pnand %p2362_p1, %p523_p2 }
   0xd   : > { %p613_p4 = scmp.lt.s32.totalorder (!%p524_p3), %s2782_s29, 1  ;;  %s3482_s5 = sld [smem:[#allocation9_spill]] (!%p524_p3) }
   0xe   : > { %527 = sbr.rel (%p524_p3) target bundleno = 2235 (0x8bb), region = 76  ;;  %s3483_s6 = sld [smem:[#allocation10_spill]] (!%p524_p3) }
   0xf   : > { %p2371_p5 = scmp.ne.s32.totalorder (!%p524_p3), %s2782_s29, 0 }
  0x13   : > { %s2895_s18 = scalar_select %p613_p4, %s2782_s29, 1 }
  0x15   : > { %s2518_s25 = sshll.u32 %s2895_s18, 4  ;;  %s637_s4 = scalar_lea.vmem %s3464_s9, %s2895_s18 }
  0x16   : > { %s2913_s20 = scalar_lea.vmem %s3482_s5, %s2518_s25  ;;  %s2918_s14 = scalar_lea.vmem %s3483_s6, %s2518_s25 }
  0x17   : > { %s2931_s28 = scalar_lea.vmem %s3465_s10, %s2518_s25  ;;  %s645_s5 = scalar_lea.vmem %s3466_s11, %s2895_s18 }
  0x18   : > { %s2521_s30 = sshll.u32 %s2895_s18, 5  ;;  %s653_s7 = scalar_lea.vmem %s3468_s13, %s2895_s18 }
  0x19   : > { %s2945_s22 = scalar_lea.vmem %s3467_s12, %s2521_s30  ;;  %659 = sbr.rel (%p2371_p5) target bundleno = 208 (0xd0), region = 80 }
  0x1e   : > { %v2533_v0 = vld [vmem:[%s3457_s2 + $0x38] sm:$0xff]  ;;  %v2532_v2 = vld [vmem:[%s3457_s2 + $0x30] sm:$0xff]  ;;  %v2531_v4 = vld [vmem:[%s3457_s2 + $0x28] sm:$0xff]  ;;  %vm856_vm0 = vcmask 261120  }
  0x1f   : > { %v2541_v1 = vld [vmem:[%s3457_s2 + $0x78] sm:$0xff]  ;;  %812 = vmatpush.bf16.msra.mxu0 %v2533_v0  ;;  %2550 = vmatpush.bf16.msra.mxu2 %v2533_v0  ;;  %v2540_v3 = vld [vmem:[%s3457_s2 + $0x70] sm:$0xff]  ;;  %v2539_v5 = vld [vmem:[%s3457_s2 + $0x68] sm:$0xff] }
  0x20   : > { %831 = vmatpush.bf16.msra.mxu1 %v2541_v1  ;;  %2558 = vmatpush.bf16.msra.mxu3 %v2541_v1  ;;  %v2530_v6 = vld [vmem:[%s3457_s2 + $0x20] sm:$0xff]  ;;  %v2529_v8 = vld [vmem:[%s3457_s2 + $0x18] sm:$0xff]  ;;  %v2528_v10 = vld [vmem:[%s3457_s2 + $0x10] sm:$0xff] }
  0x21   : > { %v2538_v7 = vld [vmem:[%s3457_s2 + $0x60] sm:$0xff]  ;;  %v2537_v9 = vld [vmem:[%s3457_s2 + $0x58] sm:$0xff]  ;;  %v2536_v11 = vld [vmem:[%s3457_s2 + $0x50] sm:$0xff] }
  0x22   : > { %v2527_v12 = vld [vmem:[%s3457_s2 + $0x8] sm:$0xff]  ;;  %v2526_v14 = vld [vmem:[%s3457_s2] sm:$0xff]  ;;  %v2382_v18 = vld [vmem:[%s3455_s0 + $0x10] sm:$0xf] }
  0x23   : > { %813 = vmatpush.bf16.msra.mxu0 %v2532_v2  ;;  %2551 = vmatpush.bf16.msra.mxu2 %v2532_v2  ;;  %v2535_v13 = vld [vmem:[%s3457_s2 + $0x48] sm:$0xff]  ;;  %v2534_v15 = vld [vmem:[%s3457_s2 + $0x40] sm:$0xff]  ;;  %v2525_v19 = vld [vmem:[%s3455_s0 + $0x14] sm:$0xf0] }
  0x24   : > { %832 = vmatpush.bf16.msra.mxu1 %v2540_v3  ;;  %2559 = vmatpush.bf16.msra.mxu3 %v2540_v3  ;;  %v2374_v16 = vld [vmem:[%s3455_s0] sm:$0xf]  ;;  %v2523_v17 = vld [vmem:[%s3455_s0 + $0x4] sm:$0xf0]  ;;  %v2522_v20 = vld [vmem:[%s3455_s0 + $0x4] sm:$0xf]  ;;  %v2383_v25 = vor.u32 %v2525_v19, %v2382_v18 }
  0x25   : > { %v2376_v21 = vld [vmem:[%s3455_s0 + $0x8] sm:$0xf0]  ;;  %v2524_v22 = vld [vmem:[%s3455_s0 + $0x14] sm:$0xf]  ;;  %v2384_v23 = vld [vmem:[%s3455_s0 + $0x18] sm:$0xf0]  ;;  %v2375_v24 = vor.u32 %v2523_v17, %v2374_v16 }
  0x26   : > { %v2379_v26 = vor.u32 %v2522_v20, %v2376_v21  ;;  %v2387_v27 = vor.u32 %v2524_v22, %v2384_v23  ;;  %v850_v30 = vld [vmem:[%s3456_s1] sm:$0xff]  ;;  %v851_v38 = vld [vmem:[%s3456_s1 + $0x8] sm:$0xff] }
  0x27   : > { %814 = vmatpush.bf16.msra.mxu0 %v2531_v4  ;;  %2552 = vmatpush.bf16.msra.mxu2 %v2531_v4 }
  0x28   : > { %833 = vmatpush.bf16.msra.mxu1 %v2539_v5  ;;  %2560 = vmatpush.bf16.msra.mxu3 %v2539_v5 }
  0x2b   : > { %815 = vmatpush.bf16.msra.mxu0 %v2530_v6  ;;  %2553 = vmatpush.bf16.msra.mxu2 %v2530_v6 }
  0x2c   : > { %834 = vmatpush.bf16.msra.mxu1 %v2538_v7  ;;  %2561 = vmatpush.bf16.msra.mxu3 %v2538_v7 }
  0x2f   : > { %816 = vmatpush.bf16.msra.mxu0 %v2529_v8  ;;  %2554 = vmatpush.bf16.msra.mxu2 %v2529_v8 }
  0x30   : > { %835 = vmatpush.bf16.msra.mxu1 %v2537_v9  ;;  %2562 = vmatpush.bf16.msra.mxu3 %v2537_v9 }
  0x33   : > { %817 = vmatpush.bf16.msra.mxu0 %v2528_v10  ;;  %2555 = vmatpush.bf16.msra.mxu2 %v2528_v10 }
  0x34   : > { %836 = vmatpush.bf16.msra.mxu1 %v2536_v11  ;;  %2563 = vmatpush.bf16.msra.mxu3 %v2536_v11 }
  0x37   : > { %818 = vmatpush.bf16.msra.mxu0 %v2527_v12  ;;  %2556 = vmatpush.bf16.msra.mxu2 %v2527_v12 }
  0x38   : > { %837 = vmatpush.bf16.msra.mxu1 %v2535_v13  ;;  %2564 = vmatpush.bf16.msra.mxu3 %v2535_v13 }
  0x3b   : > { %819 = vmatpush.bf16.msra.mxu0 %v2526_v14  ;;  %2557 = vmatpush.bf16.msra.mxu2 %v2526_v14 }
  0x3c   : > { %838 = vmatpush.bf16.msra.mxu1 %v2534_v15  ;;  %2565 = vmatpush.bf16.msra.mxu3 %v2534_v15 }
  0x3e   : > { %820 = vmatmul.bf16.vlgmr.msra.gmra.mxu0 %v2375_v24  ;;  %825 = vmatmul.bf16.vlgmr.msra.gmra.mxu2 %v2383_v25 }
  0x3f   : > { %839 = vmatmul.bf16.vlgmr.msra.gmra.mxu1 %v2379_v26  ;;  %844 = vmatmul.bf16.vlgmr.msra.gmra.mxu3 %v2387_v27 }
  0xbb   : > { %v821_v28 = vpop.f32.mrf.mxu0 }
  0xbc   : > { %v840_v29 = vpop.f32.mrf.mxu1 }
  0xbd   : > { %v841_v31 = vadd.f32 %v840_v29, %v821_v28 }
  0xbf   : > { %v852_v32 = vadd.f32 %v850_v30, %v841_v31 }
  0xc1   : > { %857 = vst.msk [vmem:[#allocation2] sm:$0xff] %vm856_vm0, %v852_v32  ;;  %v826_v33 = vpop.f32.mrf.mxu2 }
  0xc2   : > { %v845_v34 = vpop.f32.mrf.mxu3 }
  0xc3   : > { %v846_v35 = vadd.f32 %v845_v34, %v826_v33  ;;  %v823_v36 = vpop.f32.mrf.mxu0 }
  0xc4   : > { %v842_v37 = vpop.f32.mrf.mxu1 }
  0xc5   : > { %v854_v39 = vadd.f32 %v850_v30, %v846_v35  ;;  %v843_v40 = vadd.f32 %v842_v37, %v823_v36 }
  0xc7   : > { %859 = vst.msk [vmem:[#allocation2 + $0x10] sm:$0xff] %vm856_vm0, %v854_v39  ;;  %v853_v41 = vadd.f32 %v851_v38, %v843_v40 }
  0xc9   : > { %858 = vst.msk [vmem:[#allocation2 + $0x8] sm:$0xff] %vm856_vm0, %v853_v41  ;;  %v828_v42 = vpop.f32.mrf.mxu2 }
  0xca   : > { %v847_v43 = vpop.f32.mrf.mxu3 }
  0xcb   : > { %v848_v44 = vadd.f32 %v847_v43, %v828_v42 }
  0xcd   : > { %v855_v45 = vadd.f32 %v851_v38, %v848_v44 }
  0xcf   : > { %860 = vst.msk [vmem:[#allocation2 + $0x18] sm:$0xff] %vm856_vm0, %v855_v45 }
  0xd0 PF: > { %v863_v46 = vld [vmem:[#allocation2 + $0x10] sm:$0xff]  ;;  %vm867_vm1 = vcmask 261120   ;;  %v861_v47 = vld [vmem:[#allocation2] sm:$0xff]  ;;  %v862_v51 = vld [vmem:[#allocation2 + $0x8] sm:$0xff]  ;;  %v2792_v54 = vmov 32.0   ;;  %s3484_s23 = scalar_lea.vmem %s3458_s3, %s2895_s18  ;;  %s3485_s27 = sld [smem:[#allocation8_spill]] }
  0xd1   : > { %v874_v48 = vsel %vm867_vm1, %v863_v46, 0.0  ;;  %v868_v49 = vsel %vm867_vm1, %v861_v47, 0.0  ;;  %v871_v53 = vsel %vm867_vm1, %v862_v51, 0.0  ;;  %2642 = vrcp.f32 %v2792_v54  ;;  %v2543_v17 = vld [vmem:[%s2913_s20 + $0x8] sm:$0xff]  ;;  %v2542_v21 = vld [vmem:[%s2913_s20] sm:$0xff]  ;;  %s2793_s16 = smov 80  }
  0xd2   : > { %875 = vadd.xlane.f32.xlu1 %v874_v48  ;;  %869 = vadd.xlane.f32.xlu0 %v868_v49  ;;  %s2794_s19 = smov 104   ;;  %s2795_s29 = smov 56   ;;  %vm1083_vm15 = vcmask 64512  }
  0xd3   : > { %1007 = vmatpush.bf16.msra.mxu0 %v2543_v17  ;;  %s2796_s30 = smov 120   ;;  %s2797_s17 = smov 112  }
  0xd4   : > { %s3487_s21 = sld [smem:[#allocation11_spill]]  ;;  %s2800_s15 = smov 8  }
  0xd6   : > { %v864_v50 = vld [vmem:[#allocation2 + $0x18] sm:$0xff]  ;;  %s3486_s6 = scalar_lea.vmem %s3485_s27, %s2895_s18 }
  0xd7   : > { %v877_v52 = vsel %vm867_vm1, %v864_v50, 0.0  ;;  %v2643_v55 = vpop.eup %2642  ;;  %1008 = vmatpush.bf16.msra.mxu0 %v2542_v21 }
  0xd8   : > { %v881_v56 = vmul.f32 32.0, %v2643_v55  ;;  %vm885_vm2 = vweird.f32 %v2643_v55 }
  0xda   : > { %878 = vadd.xlane.f32.xlu1 %v877_v52  ;;  %872 = vadd.xlane.f32.xlu0 %v871_v53  ;;  %v882_v57 = vsub.f32 1.0, %v881_v56  ;;  %s3488_s20 = scalar_lea.vmem %s3487_s21, %s2895_s18 }
  0xdc   : > { %v883_v58 = vmul.f32 %v2643_v55, %v882_v57 }
  0xde   : > { %v884_v59 = vadd.f32 %v2643_v55, %v883_v58  ;;  %v2636_v58 = vld [vmem:[%s3486_s6] ss:$0 sm:$0xff]  ;;  %s3490_s6 = sld [smem:[#allocation6_spill]] }
  0xe0   : > { %v3033_v60 = vsel %vm885_vm2, %v2643_v55, %v884_v59  ;;  %vm1314_vm2 = vcmask 130048  }
 0x145   : > { %v876_v61 = vpop.xlane.xlu1 %875  ;;  %v870_v62 = vpop.xlane.xlu0 %869 }
 0x146   : > { %v889_v63 = vmul.f32 %v3033_v60, %v876_v61  ;;  %v887_v0 = vmul.f32 %v3033_v60, %v870_v62 }
 0x148   : > { %v3037_v1 = vsub.f32 %v863_v46, %v889_v63  ;;  %v891_v2 = vsub.f32 %v861_v47, %v887_v0 }
 0x14a   : > { %v897_v3 = vmul.f32 %v3037_v1, %v3037_v1  ;;  %v895_v4 = vmul.f32 %v891_v2, %v891_v2 }
 0x14c   : > { %v905_v5 = vsel %vm867_vm1, %v897_v3, 0.0  ;;  %v899_v6 = vsel %vm867_vm1, %v895_v4, 0.0 }
 0x14d   : > { %v879_v7 = vpop.xlane.xlu1 %878  ;;  %906 = vadd.xlane.f32.xlu0 %v905_v5  ;;  %900 = vadd.xlane.f32.xlu2 %v899_v6  ;;  %v873_v8 = vpop.xlane.xlu0 %872 }
 0x14e   : > { %v890_v9 = vmul.f32 %v3033_v60, %v879_v7  ;;  %v888_v10 = vmul.f32 %v3033_v60, %v873_v8 }
 0x150   : > { %v3045_v11 = vsub.f32 %v864_v50, %v890_v9  ;;  %v892_v12 = vsub.f32 %v862_v51, %v888_v10  ;;  %v2635_v51 = vld [vmem:[%s3484_s23] ss:$0 sm:$0xff]  ;;  %s3489_s23 = scalar_lea.vmem %s3463_s8, %s2895_s18 }
 0x152   : > { %v898_v13 = vmul.f32 %v3045_v11, %v3045_v11  ;;  %v896_v14 = vmul.f32 %v892_v12, %v892_v12 }
 0x154   : > { %v908_v15 = vsel %vm867_vm1, %v898_v13, 0.0  ;;  %v902_v16 = vsel %vm867_vm1, %v896_v14, 0.0 }
 0x155   : > { %909 = vadd.xlane.f32.xlu1 %v908_v15  ;;  %903 = vadd.xlane.f32.xlu2 %v902_v16 }
 0x1c0   : > { %v901_v18 = vpop.xlane.xlu2 %900  ;;  %v907_v20 = vpop.xlane.xlu0 %906 }
 0x1c1   : > { %v911_v19 = vmul.f32 %v901_v18, %v3033_v60  ;;  %v913_v23 = vmul.f32 %v907_v20, %v3033_v60 }
 0x1c3   : > { %v915_v22 = vadd.f32 1e-05, %v911_v19  ;;  %v917_v24 = vadd.f32 1e-05, %v913_v23 }
 0x1c5   : > { %2644 = vrsqrt.f32 %v915_v22  ;;  %vm925_vm4 = vweird.f32 %v915_v22  ;;  %vm945_vm11 = vweird.f32 %v917_v24 }
 0x1c6   : > { %2646 = vrsqrt.f32 %v917_v24 }
 0x1c8   : > { %v910_v25 = vpop.xlane.xlu1 %909  ;;  %v904_v26 = vpop.xlane.xlu2 %903 }
 0x1c9   : > { %v914_v27 = vmul.f32 %v910_v25, %v3033_v60  ;;  %v912_v28 = vmul.f32 %v904_v26, %v3033_v60 }
 0x1cb   : > { %v2645_v29 = vpop.eup %2644  ;;  %v918_v30 = vadd.f32 1e-05, %v914_v27  ;;  %v916_v31 = vadd.f32 1e-05, %v912_v28 }
 0x1cc   : > { %v920_v32 = vmul.f32 %v2645_v29, %v915_v22  ;;  %v2647_v35 = vpop.eup %2646  ;;  %vm926_vm3 = vweird.f32 %v2645_v29 }
 0x1cd   : > { %2648 = vrsqrt.f32 %v918_v30  ;;  %v940_v41 = vmul.f32 %v2647_v35, %v917_v24  ;;  %vm927_vm5 = vmor %vm925_vm4, %vm926_vm3  ;;  %vm935_vm7 = vweird.f32 %v916_v31  ;;  %vm955_vm9 = vweird.f32 %v918_v30 }
 0x1ce   : > { %v921_v33 = vmul.f32 %v2645_v29, %v920_v32  ;;  %2650 = vrsqrt.f32 %v916_v31  ;;  %vm946_vm12 = vweird.f32 %v2647_v35  ;;  %vm1743_vm3 = vcmask 1043456  }
 0x1cf   : > { %v941_v46 = vmul.f32 %v2647_v35, %v940_v41  ;;  %vm947_vm14 = vmor %vm945_vm11, %vm946_vm12 }
 0x1d0   : > { %v922_v34 = vmul.f32 0.5, %v921_v33 }
 0x1d1   : > { %v942_v52 = vmul.f32 0.5, %v941_v46 }
 0x1d2   : > { %v923_v36 = vsub.f32 1.5, %v922_v34 }
 0x1d3   : > { %v2649_v37 = vpop.eup %2648  ;;  %v943_v59 = vsub.f32 1.5, %v942_v52 }
 0x1d4   : > { %v2651_v38 = vpop.eup %2650  ;;  %v950_v39 = vmul.f32 %v2649_v37, %v918_v30  ;;  %v924_v40 = vmul.f32 %v2645_v29, %v923_v36  ;;  %vm956_vm10 = vweird.f32 %v2649_v37 }
 0x1d5   : > { %v930_v42 = vmul.f32 %v2651_v38, %v916_v31  ;;  %vm936_vm6 = vweird.f32 %v2651_v38  ;;  %vm957_vm13 = vmor %vm955_vm9, %vm956_vm10 }
 0x1d6   : > { %v951_v43 = vmul.f32 %v2649_v37, %v950_v39  ;;  %v928_v45 = vsel %vm927_vm5, %v2645_v29, %v924_v40  ;;  %vm937_vm8 = vmor %vm935_vm7, %vm936_vm6 }
 0x1d7   : > { %v931_v44 = vmul.f32 %v2651_v38, %v930_v42  ;;  %v959_v50 = vmul.f32 %v928_v45, %v891_v2  ;;  %v944_v2 = vmul.f32 %v2647_v35, %v943_v59 }
 0x1d8   : > { %v952_v48 = vmul.f32 0.5, %v951_v43 }
 0x1d9   : > { %v932_v47 = vmul.f32 0.5, %v931_v44  ;;  %v966_v57 = vmul.f32 %v2635_v51, %v959_v50  ;;  %v948_v5 = vsel %vm947_vm14, %v2647_v35, %v944_v2 }
 0x1da   : > { %v953_v54 = vsub.f32 1.5, %v952_v48  ;;  %v961_v7 = vmul.f32 %v948_v5, %v3037_v1 }
 0x1db   : > { %v933_v49 = vsub.f32 1.5, %v932_v47  ;;  %v973_v63 = vadd.f32 %v2636_v58, %v966_v57 }
 0x1dc   : > { %v954_v62 = vmul.f32 %v2649_v37, %v953_v54  ;;  %v968_v9 = vmul.f32 %v2635_v51, %v961_v7 }
 0x1dd   : > { %v934_v53 = vmul.f32 %v2651_v38, %v933_v49 }
 0x1de   : > { %v958_v4 = vsel %vm957_vm13, %v2649_v37, %v954_v62 }
 0x1df   : > { %v938_v55 = vsel %vm937_vm8, %v2651_v38, %v934_v53  ;;  %v962_v6 = vmul.f32 %v958_v4, %v3045_v11 }
 0x1e0   : > { %v960_v56 = vmul.f32 %v938_v55, %v892_v12  ;;  %v975_v12 = vadd.f32 %v2636_v58, %v968_v9 }
 0x1e1   : > { %v969_v8 = vmul.f32 %v2635_v51, %v962_v6 }
 0x1e2   : > { %v967_v61 = vmul.f32 %v2635_v51, %v960_v56 }
 0x1e3   : > { %v976_v10 = vadd.f32 %v2636_v58, %v969_v8 }
 0x1e4   : > { %v974_v0 = vadd.f32 %v2636_v58, %v967_v61 }
 0x1e5   : > { %v978_v13 = vpack.c.bf16 %v976_v10, %v975_v12 }
 0x1e6   : > { %v977_v3 = vpack.c.bf16 %v974_v0, %v973_v63 }
 0x1e8   : > { %2460 = vmatmul.msk.bf16.vlgmr.msra.gmra.mxu0 %vm867_vm1, %v977_v3 }
 0x1f8   : > { %2461 = vmatmul.msk.bf16.gmra.mxu0 %vm867_vm1, %v978_v13 }
 0x265   : > { %v1010_v14 = vpop.f32.mrf.mxu0 }
 0x266   : > { %v1060_v21 = vpack.c.bf16 %v1010_v14, %v1010_v14 }
 0x268   : > { %v1078_v26 = vunpack.c.l.b16 %v1060_v21 }
 0x26d   : > { %v1012_v15 = vpop.f32.mrf.mxu0 }
 0x26e   : > { %v2610_v16 = vpack.i.bf16 %v1012_v15, %v1010_v14  ;;  %v1061_v1 = vpack.c.bf16 %v1012_v15, %v1012_v15 }
 0x270   : > { %2611 = vrot.lane.b32.xlu0 %v2610_v16, %s2793_s16  ;;  %2606 = vrot.lane.b32.xlu2 %v2610_v16, %s2794_s19  ;;  %v1079_v25 = vunpack.c.l.b16 %v1061_v1 }
 0x272   : > { %v3072_v27 = vpack.c.b16 %v1079_v25, %v1078_v26  ;;  %v1293_v25 = vlaneseq }
 0x275   : > { %v1015_v17 = vpop.f32.mrf.mxu0 }
 0x276   : > { %v1062_v11 = vpack.c.bf16 %v1015_v17, %v1015_v17 }
 0x278   : > { %2621 = vrot.lane.b32.xlu2 %v2610_v16, %s2795_s29  ;;  %v1106_v22 = vunpack.c.l.b16 %v1062_v11 }
 0x27d   : > { %v1017_v18 = vpop.f32.mrf.mxu0 }
 0x27e   : > { %v1063_v19 = vpack.c.bf16 %v1017_v18, %v1017_v18  ;;  %v2625_v20 = vpack.i.bf16 %v1017_v18, %v1015_v17 }
 0x280   : > { %2626 = vrot.lane.b32.xlu0 %v2625_v20, %s2793_s16  ;;  %2616 = vrot.lane.b32.xlu1 %v2625_v20, %s2794_s19  ;;  %v1107_v23 = vunpack.c.l.b16 %v1063_v19 }
 0x282   : > { %v1108_v24 = vpack.c.b16 %v1107_v23, %v1106_v22 }
 0x284   : > { %1109 = vrot.lane.b32.xlu2 %v1108_v24, %s2796_s30 }
 0x288   : > { %1081 = vrot.lane.b32.xlu0 %v3072_v27, %s2796_s30  ;;  %2631 = vrot.lane.b32.xlu1 %v2625_v20, %s2795_s29  ;;  %s3491_s29 = sld [smem:[#allocation12_spill]] }
 0x2ca   : > { %v2607_v28 = vpop.permute.xlu2 %2606 }
 0x2cb   : > { %v2609_v29 = vunpack.i.h.bf16 %v2607_v28  ;;  %v2608_v30 = vunpack.i.l.bf16 %v2607_v28  ;;  %v3116_v28 = vand.u32 127, %v1293_v25 }
 0x2cd   : > { %v1065_v31 = vpack.c.bf16 %v2609_v29, %v2609_v29  ;;  %v1064_v32 = vpack.c.bf16 %v2608_v30, %v2608_v30  ;;  %vm1295_vm0 = vcmp.lt.s32.totalorder %v3116_v28, 5 }
 0x2cf   : > { %v1134_v33 = vunpack.c.l.b16 %v1065_v31  ;;  %v1133_v34 = vunpack.c.l.b16 %v1064_v32 }
 0x2d1   : > { %v3076_v35 = vpack.c.b16 %v1134_v33, %v1133_v34 }
 0x2d2   : > { %v2622_v36 = vpop.permute.xlu2 %2621 }
 0x2d3   : > { %v2624_v37 = vunpack.i.h.bf16 %v2622_v36  ;;  %v2623_v38 = vunpack.i.l.bf16 %v2622_v36  ;;  %1136 = vrot.lane.b32.xlu2 %v3076_v35, %s2796_s30 }
 0x2d5   : > { %v1073_v39 = vpack.c.bf16 %v2624_v37, %v2624_v37  ;;  %v1072_v40 = vpack.c.bf16 %v2623_v38, %v2623_v38 }
 0x2d7   : > { %v1242_v41 = vunpack.c.l.b16 %v1073_v39  ;;  %v1241_v42 = vunpack.c.l.b16 %v1072_v40 }
 0x2d9   : > { %v3080_v43 = vpack.c.b16 %v1242_v41, %v1241_v42 }
 0x2db   : > { %1244 = vrot.lane.b32.xlu2 %v3080_v43, %s2796_s30 }
 0x2de   : > { %v1110_v44 = vpop.permute.xlu2 %1109 }
 0x2df   : > { %v1115_v45 = vsel %vm1083_vm15, %v1110_v44, 0 }
 0x2e0   : > { %1124 = vmatpush.bf16.xpose.msra.mxu2 %v1115_v45 }
 0x2e2   : > { %v2612_v46 = vpop.permute.xlu0 %2611 }
 0x2e3   : > { %v2614_v47 = vunpack.i.h.bf16 %v2612_v46  ;;  %v2613_v48 = vunpack.i.l.bf16 %v2612_v46  ;;  %1562 = vrot.lane.b32.xlu2 %v3076_v35, %s2797_s17 }
 0x2e5   : > { %v1069_v49 = vpack.c.bf16 %v2614_v47, %v2614_v47  ;;  %v1068_v50 = vpack.c.bf16 %v2613_v48, %v2613_v48 }
 0x2e7   : > { %v1188_v51 = vunpack.c.l.b16 %v1069_v49  ;;  %v1187_v52 = vunpack.c.l.b16 %v1068_v50  ;;  %2463 = vmatmul.msk.bf16.vlgmr.msra.gmra.mxu2 %vm1083_vm15, %v1108_v24 }
 0x2e9   : > { %v1189_v53 = vpack.c.b16 %v1188_v51, %v1187_v52 }
 0x2eb   : > { %1537 = vrot.lane.b32.xlu2 %v1108_v24, %s2797_s17  ;;  %1190 = vrot.lane.b32.xlu1 %v1189_v53, %s2796_s30 }
 0x2f2   : > { %v2617_v54 = vpop.permute.xlu1 %2616  ;;  %v2627_v55 = vpop.permute.xlu0 %2626 }
 0x2f3   : > { %v2619_v56 = vunpack.i.h.bf16 %v2617_v54  ;;  %v2618_v57 = vunpack.i.l.bf16 %v2617_v54  ;;  %v2629_v58 = vunpack.i.h.bf16 %v2627_v55  ;;  %v2628_v59 = vunpack.i.l.bf16 %v2627_v55 }
 0x2f5   : > { %v1067_v61 = vpack.c.bf16 %v2619_v56, %v2619_v56  ;;  %v1066_v62 = vpack.c.bf16 %v2618_v57, %v2618_v57  ;;  %v1071_v63 = vpack.c.bf16 %v2629_v58, %v2629_v58  ;;  %v1070_v0 = vpack.c.bf16 %v2628_v59, %v2628_v59 }
 0x2f7   : > { %v1161_v2 = vunpack.c.l.b16 %v1067_v61  ;;  %v1160_v3 = vunpack.c.l.b16 %v1066_v62  ;;  %v1215_v4 = vunpack.c.l.b16 %v1071_v63  ;;  %v1214_v5 = vunpack.c.l.b16 %v1070_v0 }
 0x2f9   : > { %v3090_v6 = vpack.c.b16 %v1161_v2, %v1160_v3  ;;  %v3092_v7 = vpack.c.b16 %v1215_v4, %v1214_v5 }
 0x2fa   : > { %v2632_v8 = vpop.permute.xlu1 %2631  ;;  %v1082_v9 = vpop.permute.xlu0 %1081 }
 0x2fb   : > { %v2634_v10 = vunpack.i.h.bf16 %v2632_v8  ;;  %v2633_v12 = vunpack.i.l.bf16 %v2632_v8  ;;  %1163 = vrot.lane.b32.xlu0 %v3090_v6, %s2796_s30  ;;  %1217 = vrot.lane.b32.xlu1 %v3092_v7, %s2796_s30  ;;  %v1088_v13 = vsel %vm1083_vm15, %v1082_v9, 0 }
 0x2fc   : > { %1097 = vmatpush.bf16.xpose.msra.mxu1 %v1088_v13 }
 0x2fd   : > { %v1075_v14 = vpack.c.bf16 %v2634_v10, %v2634_v10  ;;  %v1074_v15 = vpack.c.bf16 %v2633_v12, %v2633_v12 }
 0x2ff   : > { %v1269_v16 = vunpack.c.l.b16 %v1075_v14  ;;  %v1268_v17 = vunpack.c.l.b16 %v1074_v15 }
 0x301   : > { %v3099_v11 = vpack.c.b16 %v1269_v16, %v1268_v17 }
 0x303   : > { %1271 = vrot.lane.b32.xlu0 %v3099_v11, %s2796_s30  ;;  %2462 = vmatmul.msk.bf16.vlgmr.msra.gmra.mxu1 %vm1083_vm15, %v3072_v27  ;;  %s2190_s30 = sshll.u32 %s3491_s29, 4  ;;  %s2191_s30 = int_to_ptr.hbm [resolvable:$true] %s2190_s30 }
 0x304   : > { %1612 = vrot.lane.b32.xlu1 %v1189_v53, %s2797_s17 }
 0x30b   : > { %1512 = vrot.lane.b32.xlu0 %v3072_v27, %s2797_s17 }
 0x32d   : > { %v1137_v18 = vpop.permute.xlu2 %1136 }
 0x32e   : > { %v1142_v1 = vsel %vm1083_vm15, %v1137_v18, 0 }
 0x32f   : > { %1151 = vmatpush.bf16.xpose.msra.mxu3 %v1142_v1 }
 0x335   : > { %v1245_v19 = vpop.permute.xlu2 %1244 }
 0x336   : > { %2464 = vmatmul.msk.bf16.vlgmr.msra.gmra.mxu3 %vm1083_vm15, %v3076_v35  ;;  %v1250_v20 = vsel %vm1083_vm15, %v1245_v19, 0 }
 0x337   : > { %1259 = vmatpush.bf16.xpose.msrb.mxu0 %v1250_v20 }
 0x33d   : > { %v1563_v21 = vpop.permute.xlu2 %1562 }
 0x33e   : > { %2468 = vmatmul.msk.bf16.vlgmr.msrb.gmra.mxu0 %vm1083_vm15, %v3080_v43 }
 0x33f   : > { %1575 = vmatpush.bf16.msra.mxu0 %v1563_v21 }
 0x345   : > { %v1538_v31 = vpop.permute.xlu2 %1537 }
 0x35d   : > { %v1191_v22 = vpop.permute.xlu1 %1190 }
 0x35e   : > { %v1196_v23 = vsel %vm1083_vm15, %v1191_v22, 0 }
 0x35f   : > { %1205 = vmatpush.bf16.xpose.msrb.mxu2 %v1196_v23 }
 0x366   : > { %2466 = vmatmul.msk.bf16.vlgmr.msrb.gmra.mxu2 %vm1083_vm15, %v1189_v53 }
 0x36a   : > { %v1126_v24 = vpop.f32.mrf.mxu2 }
 0x36b   : > { %v1300_v46 = vsel %vm1295_vm0, %v1126_v24, -1e+30 }
 0x36c   : > { %v1321_v47 = vsel %vm1314_vm2, %v1300_v46, -inf }
 0x36d   : > { %v1164_v26 = vpop.permute.xlu0 %1163  ;;  %v1218_v27 = vpop.permute.xlu1 %1217 }
 0x36e   : > { %v1169_v29 = vsel %vm1083_vm15, %v1164_v26, 0  ;;  %v1223_v30 = vsel %vm1083_vm15, %v1218_v27, 0 }
 0x36f   : > { %1178 = vmatpush.bf16.xpose.msrb.mxu1 %v1169_v29  ;;  %1232 = vmatpush.bf16.xpose.msrb.mxu3 %v1223_v30 }
 0x372   : > { %v1128_v32 = vpop.f32.mrf.mxu2 }
 0x373   : > { %v3123_v33 = vsel %vm1295_vm0, %v1128_v32, -1e+30 }
 0x374   : > { %v1324_v34 = vsel %vm1314_vm2, %v3123_v33, -inf }
 0x375   : > { %1325 = vmax.xlane.f32.xlu0 %v1324_v34  ;;  %v1272_v35 = vpop.permute.xlu0 %1271 }
 0x376   : > { %v1277_v36 = vsel %vm1083_vm15, %v1272_v35, 0  ;;  %2465 = vmatmul.msk.bf16.vlgmr.msrb.gmra.mxu1 %vm1083_vm15, %v3090_v6  ;;  %2467 = vmatmul.msk.bf16.vlgmr.msrb.gmra.mxu3 %vm1083_vm15, %v3092_v7  ;;  %v1613_v38 = vpop.permute.xlu1 %1612 }
 0x377   : > { %1550 = vmatpush.bf16.msra.mxu3 %v1538_v31  ;;  %1286 = vmatpush.bf16.xpose.msra.mxu1 %v1277_v36 }
 0x37d   : > { %v1513_v37 = vpop.permute.xlu0 %1512 }
 0x37e   : > { %1525 = vmatpush.bf16.msra.mxu2 %v1513_v37 }
 0x380   : > { %v1099_v39 = vpop.f32.mrf.mxu1 }
 0x381   : > { %v1298_v40 = vsel %vm1295_vm0, %v1099_v39, -1e+30 }
 0x382   : > { %1625 = vmatpush.bf16.msrb.mxu2 %v1613_v38  ;;  %v1315_v41 = vsel %vm1314_vm2, %v1298_v40, -inf }
 0x383   : > { %1316 = vmax.xlane.f32.xlu2 %v1315_v41 }
 0x386   : > { %2469 = vmatmul.msk.bf16.vlgmr.msra.gmra.mxu1 %vm1083_vm15, %v3099_v11 }
 0x388   : > { %v1101_v42 = vpop.f32.mrf.mxu1 }
 0x389   : > { %v1299_v44 = vsel %vm1295_vm0, %v1101_v42, -1e+30 }
 0x38a   : > { %v1318_v45 = vsel %vm1314_vm2, %v1299_v44, -inf }
 0x38b   : > { %1319 = vmax.xlane.f32.xlu1 %v1318_v45 }
 0x393   : > { %1322 = vmax.xlane.f32.xlu1 %v1321_v47 }
 0x3b9   : > { %v1153_v48 = vpop.f32.mrf.mxu3 }
 0x3ba   : > { %v3145_v49 = vsel %vm1295_vm0, %v1153_v48, -1e+30 }
 0x3bb   : > { %v1261_v50 = vpop.f32.mrf.mxu0  ;;  %v1327_v51 = vsel %vm1314_vm2, %v3145_v49, -inf }
 0x3bc   : > { %v3151_v52 = vsel %vm1295_vm0, %v1261_v50, -1e+30  ;;  %1328 = vmax.xlane.f32.xlu0 %v1327_v51 }
 0x3bd   : > { %v1351_v53 = vsel %vm1314_vm2, %v3151_v52, -inf }
 0x3be   : > { %1352 = vmax.xlane.f32.xlu1 %v1351_v53 }
 0x3c1   : > { %v1155_v61 = vpop.f32.mrf.mxu3 }
 0x3c2   : > { %v3169_v62 = vsel %vm1295_vm0, %v1155_v61, -1e+30 }
 0x3c3   : > { %v1263_v54 = vpop.f32.mrf.mxu0  ;;  %v1330_v0 = vsel %vm1314_vm2, %v3169_v62, -inf }
 0x3c4   : > { %v3157_v55 = vsel %vm1295_vm0, %v1263_v54, -1e+30 }
 0x3c5   : > { %v1354_v56 = vsel %vm1314_vm2, %v3157_v55, -inf }
 0x3c6   : > { %1355 = vmax.xlane.f32.xlu0 %v1354_v56 }
 0x3e8   : > { %v1326_v21 = vpop.xlane.xlu0 %1325 }
 0x3e9   : > { %v1207_v57 = vpop.f32.mrf.mxu2  ;;  %v1366_v26 = vsub.f32 %v3123_v33, %v1326_v21 }
 0x3ea   : > { %v3163_v58 = vsel %vm1295_vm0, %v1207_v57, -1e+30 }
 0x3eb   : > { %v1339_v59 = vsel %vm1314_vm2, %v3163_v58, -inf  ;;  %v1385_v34 = vmul.f32 1.442695, %v1366_v26 }
 0x3ec   : > { %1340 = vmax.xlane.f32.xlu2 %v1339_v59 }
 0x3f1   : > { %v1209_v20 = vpop.f32.mrf.mxu2 }
 0x3f2   : > { %v3197_v23 = vsel %vm1295_vm0, %v1209_v20, -1e+30 }
 0x3f3   : > { %v1180_v63 = vpop.f32.mrf.mxu1  ;;  %v1342_v29 = vsel %vm1314_vm2, %v3197_v23, -inf }
 0x3f4   : > { %v3175_v2 = vsel %vm1295_vm0, %v1180_v63, -1e+30  ;;  %1331 = vmax.xlane.f32.xlu2 %v1330_v0 }
 0x3f5   : > { %v1333_v3 = vsel %vm1314_vm2, %v3175_v2, -inf }
 0x3f6   : > { %v1317_v4 = vpop.xlane.xlu2 %1316  ;;  %1334 = vmax.xlane.f32.xlu0 %v1333_v3 }
 0x3f7   : > { %v1363_v5 = vsub.f32 %v1298_v40, %v1317_v4 }
 0x3f9   : > { %v1379_v8 = vmul.f32 1.442695, %v1363_v5  ;;  %v1234_v9 = vpop.f32.mrf.mxu3 }
 0x3fa   : > { %v3181_v10 = vsel %vm1295_vm0, %v1234_v9, -1e+30 }
 0x3fb   : > { %2652 = vpow2.f32 %v1379_v8  ;;  %v1345_v12 = vsel %vm1314_vm2, %v3181_v10, -inf  ;;  %v1182_v13 = vpop.f32.mrf.mxu1 }
 0x3fc   : > { %1346 = vmax.xlane.f32.xlu2 %v1345_v12  ;;  %v3187_v16 = vsel %vm1295_vm0, %v1182_v13, -1e+30 }
 0x3fd   : > { %v1336_v19 = vsel %vm1314_vm2, %v3187_v16, -inf }
 0x3fe   : > { %v1320_v14 = vpop.xlane.xlu1 %1319 }
 0x3ff   : > { %v1364_v15 = vsub.f32 %v1299_v44, %v1320_v14 }
 0x401   : > { %v3189_v17 = vpop.eup %2652  ;;  %v1381_v18 = vmul.f32 1.442695, %v1364_v15  ;;  %v1236_v32 = vpop.f32.mrf.mxu3 }
 0x402   : > { %v1411_v1 = vsel %vm1314_vm2, %v3189_v17, 0.0  ;;  %v3208_v35 = vsel %vm1295_vm0, %v1236_v32, -1e+30 }
 0x403   : > { %2654 = vpow2.f32 %v1381_v18  ;;  %1412 = vadd.xlane.f32.xlu1 %v1411_v1  ;;  %v1288_v31 = vpop.f32.mrf.mxu1  ;;  %v1348_v37 = vsel %vm1314_vm2, %v3208_v35, -inf }
 0x404   : > { %1337 = vmax.xlane.f32.xlu2 %v1336_v19  ;;  %v3212_v33 = vsel %vm1295_vm0, %v1288_v31, -1e+30 }
 0x405   : > { %v1357_v38 = vsel %vm1314_vm2, %v3212_v33, -inf }
 0x406   : > { %v1323_v22 = vpop.xlane.xlu1 %1322 }
 0x407   : > { %v1365_v24 = vsub.f32 %v1300_v46, %v1323_v22 }
 0x409   : > { %v3199_v25 = vpop.eup %2654  ;;  %v1383_v27 = vmul.f32 1.442695, %v1365_v24 }
 0x40a   : > { %v1414_v30 = vsel %vm1314_vm2, %v3199_v25, 0.0 }
 0x40b   : > { %2656 = vpow2.f32 %v1383_v27  ;;  %1343 = vmax.xlane.f32.xlu1 %v1342_v29  ;;  %1415 = vadd.xlane.f32.xlu0 %v1414_v30  ;;  %v1290_v40 = vpop.f32.mrf.mxu1 }
 0x40c   : > { %2658 = vpow2.f32 %v1385_v34  ;;  %v3226_v42 = vsel %vm1295_vm0, %v1290_v40, -1e+30  ;;  %vm2145_vm0 = vcmask 523264  }
 0x40d   : > { %v1360_v45 = vsel %vm1314_vm2, %v3226_v42, -inf }
 0x411   : > { %v3214_v36 = vpop.eup %2656 }
 0x412   : > { %v1417_v39 = vsel %vm1314_vm2, %v3214_v36, 0.0  ;;  %v3222_v41 = vpop.eup %2658 }
 0x413   : > { %1349 = vmax.xlane.f32.xlu1 %v1348_v37  ;;  %1358 = vmax.xlane.f32.xlu0 %v1357_v38  ;;  %v1420_v44 = vsel %vm1314_vm2, %v3222_v41, 0.0 }
 0x414   : > { %1418 = vadd.xlane.f32.xlu2 %v1417_v39 }
 0x41b   : > { %1421 = vadd.xlane.f32.xlu1 %v1420_v44 }
 0x41c   : > { %1361 = vmax.xlane.f32.xlu2 %v1360_v45 }
 0x427   : > { %1587 = vrot.lane.b32.xlu0 %v3090_v6, %s2797_s17 }
 0x42f   : > { %v1329_v46 = vpop.xlane.xlu0 %1328 }
 0x430   : > { %v1367_v47 = vsub.f32 %v3145_v49, %v1329_v46 }
 0x431   : > { %v1353_v48 = vpop.xlane.xlu1 %1352 }
 0x432   : > { %v1387_v50 = vmul.f32 1.442695, %v1367_v47  ;;  %v1375_v28 = vsub.f32 %v3151_v52, %v1353_v48 }
 0x434   : > { %2660 = vpow2.f32 %v1387_v50  ;;  %v1403_v51 = vmul.f32 1.442695, %v1375_v28 }
 0x436   : > { %2662 = vpow2.f32 %v1403_v51 }
 0x439   : > { %v1356_v53 = vpop.xlane.xlu0 %1355 }
 0x43a   : > { %v3236_v54 = vpop.eup %2660  ;;  %v1376_v56 = vsub.f32 %v3157_v55, %v1356_v53 }
 0x43b   : > { %v1423_v57 = vsel %vm1314_vm2, %v3236_v54, 0.0 }
 0x43c   : > { %v3241_v59 = vpop.eup %2662  ;;  %v1405_v6 = vmul.f32 1.442695, %v1376_v56  ;;  %1424 = vadd.xlane.f32.xlu2 %v1423_v57 }
 0x43d   : > { %v1447_v49 = vsel %vm1314_vm2, %v3241_v59, 0.0 }
 0x43e   : > { %2664 = vpow2.f32 %v1405_v6  ;;  %1448 = vadd.xlane.f32.xlu1 %v1447_v49 }
 0x444   : > { %v3245_v52 = vpop.eup %2664 }
 0x445   : > { %v1450_v61 = vsel %vm1314_vm2, %v3245_v52, 0.0 }
 0x446   : > { %1451 = vadd.xlane.f32.xlu1 %v1450_v61 }
 0x45f   : > { %v1341_v63 = vpop.xlane.xlu2 %1340 }
 0x460   : > { %v1371_v55 = vsub.f32 %v3163_v58, %v1341_v63 }
 0x462   : > { %v1395_v0 = vmul.f32 1.442695, %v1371_v55 }
 0x464   : > { %2666 = vpow2.f32 %v1395_v0 }
 0x467   : > { %v1332_v3 = vpop.xlane.xlu2 %1331 }
 0x468   : > { %v1368_v4 = vsub.f32 %v3169_v62, %v1332_v3 }
 0x469   : > { %v1335_v5 = vpop.xlane.xlu0 %1334 }
 0x46a   : > { %v3251_v8 = vpop.eup %2666  ;;  %v1389_v9 = vmul.f32 1.442695, %v1368_v4  ;;  %v1369_v12 = vsub.f32 %v3175_v2, %v1335_v5 }
 0x46b   : > { %v1435_v13 = vsel %vm1314_vm2, %v3251_v8, 0.0 }
 0x46c   : > { %2668 = vpow2.f32 %v1389_v9  ;;  %v1391_v14 = vmul.f32 1.442695, %v1369_v12  ;;  %1436 = vadd.xlane.f32.xlu2 %v1435_v13 }
 0x46e   : > { %2670 = vpow2.f32 %v1391_v14 }
 0x46f   : > { %v1347_v15 = vpop.xlane.xlu2 %1346 }
 0x470   : > { %v1373_v58 = vsub.f32 %v3181_v10, %v1347_v15 }
 0x472   : > { %v3257_v18 = vpop.eup %2668  ;;  %v1399_v1 = vmul.f32 1.442695, %v1373_v58 }
 0x473   : > { %v1426_v62 = vsel %vm1314_vm2, %v3257_v18, 0.0 }
 0x474   : > { %v3261_v19 = vpop.eup %2670  ;;  %2672 = vpow2.f32 %v1399_v1  ;;  %1427 = vadd.xlane.f32.xlu1 %v1426_v62 }
 0x475   : > { %v1429_v2 = vsel %vm1314_vm2, %v3261_v19, 0.0 }
 0x476   : > { %1430 = vadd.xlane.f32.xlu0 %v1429_v2  ;;  %v1413_v20 = vpop.xlane.xlu1 %1412 }
 0x477   : > { %2674 = vrcp.f32 %v1413_v20  ;;  %v1338_v22 = vpop.xlane.xlu2 %1337 }
 0x478   : > { %v1370_v30 = vsub.f32 %v3187_v16, %v1338_v22 }
 0x47a   : > { %v3265_v21 = vpop.eup %2672  ;;  %v1393_v34 = vmul.f32 1.442695, %v1370_v30 }
 0x47b   : > { %v1441_v10 = vsel %vm1314_vm2, %v3265_v21, 0.0 }
 0x47c   : > { %1442 = vadd.xlane.f32.xlu2 %v1441_v10 }
 0x47d   : > { %v2675_v27 = vpop.eup %2674 }
 0x47e   : > { %v1416_v24 = vpop.xlane.xlu0 %1415  ;;  %v1344_v26 = vpop.xlane.xlu1 %1343  ;;  %v1475_v32 = vmul.f32 %v2675_v27, %v3189_v17 }
 0x47f   : > { %2676 = vrcp.f32 %v1416_v24  ;;  %v1372_v29 = vsub.f32 %v3197_v23, %v1344_v26 }
 0x480   : > { %v1491_v38 = vpack.c.bf16 %v1475_v32, %v1475_v32  ;;  %v1723_v32 = vld [vmem:[%s2918_s14] sm:$0xf] }
 0x481   : > { %v1397_v31 = vmul.f32 1.442695, %v1372_v29 }
 0x482   : > { %v1509_v16 = vunpack.c.l.b16 %v1491_v38 }
 0x483   : > { %2678 = vpow2.f32 %v1397_v31 }
 0x484   : > { %2680 = vpow2.f32 %v1393_v34  ;;  %v1745_v34 = vsel %vm1743_vm3, %v1723_v32, 0 }
 0x485   : > { %v2677_v37 = vpop.eup %2676 }
 0x486   : > { %v1476_v39 = vmul.f32 %v2677_v37, %v3199_v25  ;;  %v1350_v40 = vpop.xlane.xlu1 %1349  ;;  %v1359_v56 = vpop.xlane.xlu0 %1358 }
 0x487   : > { %v1419_v44 = vpop.xlane.xlu2 %1418  ;;  %v1374_v45 = vsub.f32 %v3208_v35, %v1350_v40 }
 0x488   : > { %v1492_v46 = vpack.c.bf16 %v1476_v39, %v1476_v39  ;;  %2682 = vrcp.f32 %v1419_v44 }
 0x489   : > { %v3274_v47 = vpop.eup %2678  ;;  %v1401_v23 = vmul.f32 1.442695, %v1374_v45 }
 0x48a   : > { %v1510_v48 = vunpack.c.l.b16 %v1492_v46  ;;  %v1438_v17 = vsel %vm1314_vm2, %v3274_v47, 0.0  ;;  %v3278_v28 = vpop.eup %2680 }
 0x48b   : > { %1439 = vadd.xlane.f32.xlu1 %v1438_v17  ;;  %2684 = vpow2.f32 %v1401_v23  ;;  %v1432_v61 = vsel %vm1314_vm2, %v3278_v28, 0.0 }
 0x48c   : > { %v1511_v50 = vpack.c.b16 %v1510_v48, %v1509_v16 }
 0x48e   : > { %2470 = vmatmul.msk.bf16.vlgmr.msra.gmra.mxu2 %vm1314_vm2, %v1511_v50  ;;  %v1422_v25 = vpop.xlane.xlu1 %1421  ;;  %v2683_v35 = vpop.eup %2682 }
 0x48f   : > { %v1362_v51 = vpop.xlane.xlu2 %1361  ;;  %2686 = vrcp.f32 %v1422_v25  ;;  %v1477_v6 = vmul.f32 %v2683_v35, %v3214_v36  ;;  %1754 = vmatpush.bf16.msra.mxu2 %v1745_v34 }
 0x490   : > { %v1378_v53 = vsub.f32 %v3226_v42, %v1362_v51 }
 0x491   : > { %v3282_v57 = vpop.eup %2684  ;;  %v1493_v42 = vpack.c.bf16 %v1477_v6, %v1477_v6 }
 0x492   : > { %v1409_v49 = vmul.f32 1.442695, %v1378_v53  ;;  %v1444_v63 = vsel %vm1314_vm2, %v3282_v57, 0.0 }
 0x493   : > { %1433 = vadd.xlane.f32.xlu1 %v1432_v61  ;;  %1445 = vadd.xlane.f32.xlu0 %v1444_v63  ;;  %v1534_v5 = vunpack.c.l.b16 %v1493_v42 }
 0x494   : > { %2688 = vpow2.f32 %v1409_v49  ;;  %1637 = vrot.lane.b32.xlu2 %v3092_v7, %s2797_s17  ;;  %v1377_v7 = vsub.f32 %v3212_v33, %v1359_v56 }
 0x495   : > { %v2687_v55 = vpop.eup %2686 }
 0x496   : > { %v1478_v0 = vmul.f32 %v2687_v55, %v3222_v41  ;;  %v1407_v41 = vmul.f32 1.442695, %v1377_v7 }
 0x498   : > { %v1494_v3 = vpack.c.bf16 %v1478_v0, %v1478_v0  ;;  %2690 = vpow2.f32 %v1407_v41 }
 0x499   : > { %v1588_v4 = vpop.permute.xlu0 %1587 }
 0x49a   : > { %v3292_v36 = vpop.eup %2688  ;;  %v1535_v9 = vunpack.c.l.b16 %v1494_v3  ;;  %1600 = vmatpush.bf16.msrb.mxu1 %v1588_v4 }
 0x49b   : > { %v1456_v12 = vsel %vm1314_vm2, %v3292_v36, 0.0 }
 0x49c   : > { %v1536_v13 = vpack.c.b16 %v1535_v9, %v1534_v5  ;;  %1457 = vadd.xlane.f32.xlu0 %v1456_v12  ;;  %1687 = vrot.lane.b32.xlu2 %v3099_v11, %s2797_s17 }
 0x49e   : > { %2471 = vmatmul.msk.bf16.vlgmr.msra.gmra.mxu3 %vm1314_vm2, %v1536_v13  ;;  %v3302_v14 = vpop.eup %2690 }
 0x49f   : > { %v1453_v58 = vsel %vm1314_vm2, %v3302_v14, 0.0 }
 0x4ac   : > { %1662 = vrot.lane.b32.xlu1 %v3080_v43, %s2797_s17  ;;  %s3492_s17 = sadd.s32 4294967295, %s3490_s6  }
 0x4ad   : > { %p2570_p6 = scmp.eq.s32.totalorder %s3492_s17, 1 }
 0x4af   : > { %v1425_v1 = vpop.xlane.xlu2 %1424 }
 0x4b0   : > { %2692 = vrcp.f32 %v1425_v1 }
 0x4b1   : > { %v1449_v15 = vpop.xlane.xlu1 %1448 }
 0x4b6   : > { %v2693_v20 = vpop.eup %2692 }
 0x4b7   : > { %v1479_v43 = vmul.f32 %v2693_v20, %v3236_v54 }
 0x4b9   : > { %v1452_v62 = vpop.xlane.xlu1 %1451  ;;  %v1495_v10 = vpack.c.bf16 %v1479_v43, %v1479_v43 }
 0x4bb   : > { %v1559_v27 = vunpack.c.l.b16 %v1495_v10 }
 0x4d6   : > { %1454 = vadd.xlane.f32.xlu1 %v1453_v58 }
 0x4df   : > { %v1437_v11 = vpop.xlane.xlu2 %1436 }
 0x4e7   : > { %v1428_v2 = vpop.xlane.xlu1 %1427 }
 0x4e8   : > { %2694 = vrcp.f32 %v1428_v2 }
 0x4e9   : > { %2696 = vrcp.f32 %v1437_v11  ;;  %v1431_v37 = vpop.xlane.xlu0 %1430 }
 0x4ee   : > { %v2695_v33 = vpop.eup %2694 }
 0x4ef   : > { %v1480_v22 = vmul.f32 %v2695_v33, %v3257_v18  ;;  %v1443_v24 = vpop.xlane.xlu2 %1442  ;;  %v2697_v38 = vpop.eup %2696 }
 0x4f0   : > { %v1483_v39 = vmul.f32 %v2697_v38, %v3251_v8 }
 0x4f1   : > { %v1496_v26 = vpack.c.bf16 %v1480_v22, %v1480_v22 }
 0x4f2   : > { %v1499_v44 = vpack.c.bf16 %v1483_v39, %v1483_v39 }
 0x4f3   : > { %v1560_v29 = vunpack.c.l.b16 %v1496_v26 }
 0x4f4   : > { %v1609_v50 = vunpack.c.l.b16 %v1499_v44  ;;  %v1724_v44 = vld [vmem:[%s2918_s14 + $0x4] sm:$0xf] }
 0x4f5   : > { %v1561_v30 = vpack.c.b16 %v1560_v29, %v1559_v27 }
 0x4f7   : > { %v1638_v31 = vpop.permute.xlu2 %1637  ;;  %2472 = vmatmul.msk.bf16.vlgmr.msra.gmra.mxu0 %vm1314_vm2, %v1561_v30 }
 0x4f8   : > { %1650 = vmatpush.bf16.msrb.mxu3 %v1638_v31 }
 0x4fe   : > { %v1440_v54 = vpop.xlane.xlu1 %1439 }
 0x4ff   : > { %2698 = vrcp.f32 %v1440_v54  ;;  %v1688_v18 = vpop.permute.xlu2 %1687 }
 0x500   : > { %1700 = vmatpush.bf16.msra.mxu1 %v1688_v18  ;;  %2700 = vrcp.f32 %v1431_v37 }
 0x501   : > { %2702 = vrcp.f32 %v1443_v24 }
 0x505   : > { %v2699_v40 = vpop.eup %2698 }
 0x506   : > { %v1484_v45 = vmul.f32 %v2699_v40, %v3274_v47  ;;  %v1434_v46 = vpop.xlane.xlu1 %1433  ;;  %v2701_v23 = vpop.eup %2700 }
 0x507   : > { %v1446_v16 = vpop.xlane.xlu0 %1445  ;;  %2704 = vrcp.f32 %v1434_v46  ;;  %v2703_v48 = vpop.eup %2702  ;;  %v1481_v25 = vmul.f32 %v2701_v23, %v3261_v19 }
 0x508   : > { %v1500_v17 = vpack.c.bf16 %v1484_v45, %v1484_v45  ;;  %2706 = vrcp.f32 %v1446_v16  ;;  %v1485_v51 = vmul.f32 %v2703_v48, %v3265_v21  ;;  %v1783_v45 = vsel %vm1743_vm3, %v1724_v44, 0  ;;  %v1725_v48 = vld [vmem:[%s2918_s14 + $0x8] sm:$0xf] }
 0x509   : > { %2708 = vrcp.f32 %v1452_v62  ;;  %v1497_v6 = vpack.c.bf16 %v1481_v25, %v1481_v25  ;;  %1792 = vmatpush.bf16.msra.mxu3 %v1783_v45  ;;  %v2732_v45 = vld [vmem:[#allocation2] sm:$0xff] }
 0x50a   : > { %v1610_v35 = vunpack.c.l.b16 %v1500_v17  ;;  %2710 = vrcp.f32 %v1449_v15  ;;  %v1501_v49 = vpack.c.bf16 %v1485_v51, %v1485_v51  ;;  %v1821_v17 = vsel %vm1743_vm3, %v1725_v48, 0 }
 0x50b   : > { %v1584_v0 = vunpack.c.l.b16 %v1497_v6 }
 0x50c   : > { %v1611_v8 = vpack.c.b16 %v1610_v35, %v1609_v50  ;;  %v1634_v21 = vunpack.c.l.b16 %v1501_v49  ;;  %v1726_v35 = vld [vmem:[%s2918_s14 + $0xc] sm:$0xf]  ;;  %s2799_s14 = smov 128  }
 0x50d   : > { %v2705_v53 = vpop.eup %2704  ;;  %v1859_v51 = vsel %vm1743_vm3, %v1726_v35, 0 }
 0x50e   : > { %v2707_v56 = vpop.eup %2706  ;;  %v1482_v47 = vmul.f32 %v2705_v53, %v3278_v28  ;;  %2474 = vmatmul.msk.bf16.vlgmr.msrb.gmra.mxu2 %vm1314_vm2, %v1611_v8 }
 0x50f   : > { %v1486_v61 = vmul.f32 %v2707_v56, %v3282_v57  ;;  %v2709_v55 = vpop.eup %2708  ;;  %v1458_v29 = vpop.xlane.xlu0 %1457 }
 0x510   : > { %v1498_v63 = vpack.c.bf16 %v1482_v47, %v1482_v47  ;;  %v2711_v4 = vpop.eup %2710  ;;  %v1488_v9 = vmul.f32 %v2709_v55, %v3245_v52  ;;  %2712 = vrcp.f32 %v1458_v29 }
 0x511   : > { %v1502_v42 = vpack.c.bf16 %v1486_v61, %v1486_v61  ;;  %v1527_v19 = vpop.f32.mrf.mxu2  ;;  %v1487_v28 = vmul.f32 %v2711_v4, %v3241_v59 }
 0x512   : > { %v1585_v3 = vunpack.c.l.b16 %v1498_v63  ;;  %v1504_v57 = vpack.c.bf16 %v1488_v9, %v1488_v9  ;;  %v1707_v7 = vpack.c.bf16 %v1527_v19, %v1527_v19 }
 0x513   : > { %v1635_v5 = vunpack.c.l.b16 %v1502_v42  ;;  %v1503_v15 = vpack.c.bf16 %v1487_v28, %v1487_v28 }
 0x514   : > { %v1586_v12 = vpack.c.b16 %v1585_v3, %v1584_v0  ;;  %v1660_v1 = vunpack.c.l.b16 %v1504_v57  ;;  %v1731_v62 = vunpack.c.l.b16 %v1707_v7 }
 0x515   : > { %v1636_v13 = vpack.c.b16 %v1635_v5, %v1634_v21  ;;  %v1659_v2 = vunpack.c.l.b16 %v1503_v15 }
 0x516   : > { %2473 = vmatmul.msk.bf16.vlgmr.msrb.gmra.mxu1 %vm1314_vm2, %v1586_v12  ;;  %v2713_v31 = vpop.eup %2712 }
 0x517   : > { %2475 = vmatmul.msk.bf16.vlgmr.msrb.gmra.mxu3 %vm1314_vm2, %v1636_v13  ;;  %v1661_v52 = vpack.c.b16 %v1660_v1, %v1659_v2  ;;  %v1490_v32 = vmul.f32 %v2713_v31, %v3292_v36  ;;  %1868 = vmatpush.bf16.msrb.mxu1 %v1859_v51  ;;  %v2733_v51 = vld [vmem:[#allocation2 + $0x8] sm:$0xff] }
 0x519   : > { %v1529_v41 = vpop.f32.mrf.mxu2  ;;  %v1506_v37 = vpack.c.bf16 %v1490_v32, %v1490_v32 }
 0x51a   : > { %v1708_v58 = vpack.c.bf16 %v1529_v41, %v1529_v41 }
 0x51b   : > { %v1685_v18 = vunpack.c.l.b16 %v1506_v37 }
 0x51c   : > { %v1732_v11 = vunpack.c.l.b16 %v1708_v58 }
 0x51e   : > { %v1735_v20 = vpack.c.b16 %v1732_v11, %v1731_v62  ;;  %v1663_v43 = vpop.permute.xlu1 %1662 }
 0x51f   : > { %1675 = vmatpush.bf16.msrb.mxu0 %v1663_v43 }
 0x520   : > { %2478 = vmatmul.msk.bf16.vlgmr.msra.gmra.mxu2 %vm1083_vm15, %v1735_v20 }
 0x521   : > { %v1552_v59 = vpop.f32.mrf.mxu3 }
 0x522   : > { %2476 = vmatmul.msk.bf16.vlgmr.msrb.gmra.mxu0 %vm1314_vm2, %v1661_v52  ;;  %v1709_v33 = vpack.c.bf16 %v1552_v59, %v1552_v59 }
 0x523   : > { %1830 = vmatpush.bf16.msra.mxu0 %v1821_v17 }
 0x524   : > { %v1733_v24 = vunpack.c.l.b16 %v1709_v33 }
 0x529   : > { %v1554_v10 = vpop.f32.mrf.mxu3 }
 0x52a   : > { %v1710_v22 = vpack.c.bf16 %v1554_v10, %v1554_v10 }
 0x52c   : > { %v1734_v26 = vunpack.c.l.b16 %v1710_v22 }
 0x52e   : > { %v1736_v27 = vpack.c.b16 %v1734_v26, %v1733_v24 }
 0x530   : > { %2479 = vmatmul.msk.bf16.gmra.mxu2 %vm1083_vm15, %v1736_v27 }
 0x549   : > { %v1455_v30 = vpop.xlane.xlu1 %1454 }
 0x54a   : > { %2714 = vrcp.f32 %v1455_v30 }
 0x550   : > { %v2715_v34 = vpop.eup %2714 }
 0x551   : > { %v1489_v54 = vmul.f32 %v2715_v34, %v3302_v14 }
 0x553   : > { %v1505_v38 = vpack.c.bf16 %v1489_v54, %v1489_v54 }
 0x555   : > { %v1684_v39 = vunpack.c.l.b16 %v1505_v38 }
 0x557   : > { %v1686_v40 = vpack.c.b16 %v1685_v18, %v1684_v39 }
 0x559   : > { %2477 = vmatmul.msk.bf16.vlgmr.msra.gmra.mxu1 %vm1314_vm2, %v1686_v40  ;;  %v2637_v40 = vld [vmem:[%s3488_s20] ss:$0 sm:$0xff] }
 0x574   : > { %v1577_v46 = vpop.f32.mrf.mxu0 }
 0x575   : > { %v1711_v23 = vpack.c.bf16 %v1577_v46, %v1577_v46 }
 0x577   : > { %v1770_v14 = vunpack.c.l.b16 %v1711_v23 }
 0x57c   : > { %v1579_v16 = vpop.f32.mrf.mxu0 }
 0x57d   : > { %v1712_v36 = vpack.c.bf16 %v1579_v16, %v1579_v16 }
 0x57f   : > { %v1771_v50 = vunpack.c.l.b16 %v1712_v36 }
 0x581   : > { %v1774_v25 = vpack.c.b16 %v1771_v50, %v1770_v14 }
 0x583   : > { %2480 = vmatmul.msk.bf16.vlgmr.msra.gmra.mxu3 %vm1083_vm15, %v1774_v25 }
 0x591   : > { %v1627_v8 = vpop.f32.mrf.mxu2 }
 0x592   : > { %v1715_v56 = vpack.c.bf16 %v1627_v8, %v1627_v8 }
 0x593   : > { %v1602_v53 = vpop.f32.mrf.mxu1 }
 0x594   : > { %v1713_v47 = vpack.c.bf16 %v1602_v53, %v1602_v53  ;;  %v1808_v55 = vunpack.c.l.b16 %v1715_v56 }
 0x596   : > { %v1772_v0 = vunpack.c.l.b16 %v1713_v47 }
 0x599   : > { %v1629_v6 = vpop.f32.mrf.mxu2 }
 0x59a   : > { %v1716_v49 = vpack.c.bf16 %v1629_v6, %v1629_v6  ;;  %v1652_v61 = vpop.f32.mrf.mxu3 }
 0x59b   : > { %v1604_v63 = vpop.f32.mrf.mxu1  ;;  %v1717_v57 = vpack.c.bf16 %v1652_v61, %v1652_v61 }
 0x59c   : > { %v1809_v42 = vunpack.c.l.b16 %v1716_v49  ;;  %v1714_v19 = vpack.c.bf16 %v1604_v63, %v1604_v63 }
 0x59d   : > { %v1810_v1 = vunpack.c.l.b16 %v1717_v57 }
 0x59e   : > { %v1812_v3 = vpack.c.b16 %v1809_v42, %v1808_v55  ;;  %v1773_v4 = vunpack.c.l.b16 %v1714_v19 }
 0x59f   : > { %v1677_v21 = vpop.f32.mrf.mxu0 }
 0x5a0   : > { %v1775_v5 = vpack.c.b16 %v1773_v4, %v1772_v0  ;;  %2482 = vmatmul.msk.bf16.vlgmr.msra.gmra.mxu0 %vm1083_vm15, %v1812_v3  ;;  %v1719_v12 = vpack.c.bf16 %v1677_v21, %v1677_v21 }
 0x5a2   : > { %2481 = vmatmul.msk.bf16.gmra.mxu3 %vm1083_vm15, %v1775_v5  ;;  %v1654_v9 = vpop.f32.mrf.mxu3  ;;  %v1846_v41 = vunpack.c.l.b16 %v1719_v12 }
 0x5a3   : > { %v1718_v13 = vpack.c.bf16 %v1654_v9, %v1654_v9  ;;  %v1756_v24 = vpop.f32.mrf.mxu2 }
 0x5a4   : > { %v1880_v29 = vsel %vm867_vm1, %v1756_v24, 0.0 }
 0x5a5   : > { %v1811_v15 = vunpack.c.l.b16 %v1718_v13  ;;  %v2734_v13 = vld [vmem:[#allocation2 + $0x10] sm:$0xff] }
 0x5a7   : > { %v1679_v28 = vpop.f32.mrf.mxu0  ;;  %v1813_v11 = vpack.c.b16 %v1811_v15, %v1810_v1 }
 0x5a8   : > { %v1720_v7 = vpack.c.bf16 %v1679_v28, %v1679_v28 }
 0x5aa   : > { %v1847_v58 = vunpack.c.l.b16 %v1720_v7 }
 0x5ab   : > { %v1758_v38 = vpop.f32.mrf.mxu2 }
 0x5ac   : > { %v1850_v62 = vpack.c.b16 %v1847_v58, %v1846_v41  ;;  %v1887_v23 = vsel %vm867_vm1, %v1758_v38, 0.0 }
 0x5ae   : > { %2484 = vmatmul.msk.bf16.vlgmr.msrb.gmra.mxu1 %vm1083_vm15, %v1850_v62 }
 0x5b0   : > { %2483 = vmatmul.msk.bf16.gmra.mxu0 %vm1083_vm15, %v1813_v11 }
 0x5b3   : > { %v1761_v47 = vpop.f32.mrf.mxu2 }
 0x5b4   : > { %v1894_v63 = vsel %vm867_vm1, %v1761_v47, 0.0 }
 0x5bb   : > { %v1763_v21 = vpop.f32.mrf.mxu2 }
 0x5bc   : > { %v1901_v57 = vsel %vm867_vm1, %v1763_v21, 0.0 }
 0x5d6   : > { %v1702_v2 = vpop.f32.mrf.mxu1 }
 0x5d7   : > { %v1721_v20 = vpack.c.bf16 %v1702_v2, %v1702_v2 }
 0x5d9   : > { %v1848_v59 = vunpack.c.l.b16 %v1721_v20  ;;  %v2735_v20 = vld [vmem:[#allocation2 + $0x18] sm:$0xff] }
 0x5de   : > { %v1704_v43 = vpop.f32.mrf.mxu1 }
 0x5df   : > { %v1722_v52 = vpack.c.bf16 %v1704_v43, %v1704_v43 }
 0x5e1   : > { %v1849_v33 = vunpack.c.l.b16 %v1722_v52 }
 0x5e3   : > { %v1851_v10 = vpack.c.b16 %v1849_v33, %v1848_v59 }
 0x5e5   : > { %2485 = vmatmul.msk.bf16.gmra.mxu1 %vm1083_vm15, %v1851_v10 }
 0x606   : > { %v1794_v22 = vpop.f32.mrf.mxu3 }
 0x607   : > { %v1881_v27 = vsel %vm867_vm1, %v1794_v22, 0.0 }
 0x608   : > { %v1882_v31 = vadd.f32 %v1881_v27, %v1880_v29 }
 0x60e   : > { %v1796_v32 = vpop.f32.mrf.mxu3 }
 0x60f   : > { %v1888_v44 = vsel %vm867_vm1, %v1796_v32, 0.0 }
 0x610   : > { %v1889_v48 = vadd.f32 %v1888_v44, %v1887_v23  ;;  %v2545_v23 = vld [vmem:[%s2931_s28 + $0x8] sm:$0xff] }
 0x611   : > { %2058 = vmatpush.bf16.msrb.mxu2 %v2545_v23  ;;  %v2549_v23 = vld [vmem:[%s2945_s22 + $0x18] sm:$0xff] }
 0x612   : > { %2156 = vmatpush.bf16.msrb.mxu3 %v2549_v23 }
 0x61d   : > { %v1832_v26 = vpop.f32.mrf.mxu0 }
 0x61e   : > { %v1883_v30 = vsel %vm867_vm1, %v1832_v26, 0.0 }
 0x61f   : > { %v1884_v34 = vadd.f32 %v1883_v30, %v1882_v31 }
 0x625   : > { %v1834_v18 = vpop.f32.mrf.mxu0  ;;  %v1799_v6 = vpop.f32.mrf.mxu3 }
 0x626   : > { %v1890_v16 = vsel %vm867_vm1, %v1834_v18, 0.0  ;;  %v1895_v61 = vsel %vm867_vm1, %v1799_v6, 0.0 }
 0x627   : > { %v1891_v17 = vadd.f32 %v1890_v16, %v1889_v48  ;;  %v1896_v42 = vadd.f32 %v1895_v61, %v1894_v63 }
 0x62b   : > { %v1870_v37 = vpop.f32.mrf.mxu1 }
 0x62c   : > { %v1885_v54 = vsel %vm867_vm1, %v1870_v37, 0.0 }
 0x62d   : > { %v1886_v39 = vadd.f32 %v1885_v54, %v1884_v34  ;;  %v1837_v49 = vpop.f32.mrf.mxu0  ;;  %v1801_v19 = vpop.f32.mrf.mxu3 }
 0x62e   : > { %v1897_v55 = vsel %vm867_vm1, %v1837_v49, 0.0  ;;  %v1902_v12 = vsel %vm867_vm1, %v1801_v19, 0.0 }
 0x62f   : > { %v1908_v46 = vadd.f32 %v2732_v45, %v1886_v39  ;;  %v1898_v0 = vadd.f32 %v1897_v55, %v1896_v42  ;;  %v1903_v41 = vadd.f32 %v1902_v12, %v1901_v57 }
 0x631   : > { %v3352_v36 = vadd.f32 %v2637_v40, %v1908_v46 }
 0x633   : > { %v1872_v14 = vpop.f32.mrf.mxu1  ;;  %v1922_v50 = vsel %vm867_vm1, %v3352_v36, 0.0 }
 0x634   : > { %v1892_v25 = vsel %vm867_vm1, %v1872_v14, 0.0  ;;  %1923 = vadd.xlane.f32.xlu1 %v1922_v50  ;;  %v2544_v14 = vld [vmem:[%s2931_s28] sm:$0xff] }
 0x635   : > { %v1893_v35 = vadd.f32 %v1892_v25, %v1891_v17  ;;  %v1839_v5 = vpop.f32.mrf.mxu0  ;;  %2059 = vmatpush.bf16.msrb.mxu2 %v2544_v14 }
 0x636   : > { %v1904_v7 = vsel %vm867_vm1, %v1839_v5, 0.0 }
 0x637   : > { %v1909_v8 = vadd.f32 %v2733_v51, %v1893_v35  ;;  %v1905_v58 = vadd.f32 %v1904_v7, %v1903_v41 }
 0x639   : > { %v3357_v53 = vadd.f32 %v2637_v40, %v1909_v8 }
 0x63b   : > { %v1925_v56 = vsel %vm867_vm1, %v3357_v53, 0.0 }
 0x63c   : > { %1926 = vadd.xlane.f32.xlu2 %v1925_v56 }
 0x662   : > { %v1875_v3 = vpop.f32.mrf.mxu1 }
 0x663   : > { %v1899_v4 = vsel %vm867_vm1, %v1875_v3, 0.0  ;;  %v2638_v3 = vld [vmem:[%s3489_s23] ss:$0 sm:$0xff] }
 0x664   : > { %v1900_v9 = vadd.f32 %v1899_v4, %v1898_v0 }
 0x666   : > { %v1910_v28 = vadd.f32 %v2734_v13, %v1900_v9  ;;  %v2639_v9 = vld [vmem:[%s637_s4] ss:$0 sm:$0xff] }
 0x668   : > { %v3368_v15 = vadd.f32 %v2637_v40, %v1910_v28 }
 0x66a   : > { %v1877_v1 = vpop.f32.mrf.mxu1  ;;  %v1928_v62 = vsel %vm867_vm1, %v3368_v15, 0.0 }
 0x66b   : > { %v1906_v11 = vsel %vm867_vm1, %v1877_v1, 0.0  ;;  %1929 = vadd.xlane.f32.xlu1 %v1928_v62 }
 0x66c   : > { %v1907_v2 = vadd.f32 %v1906_v11, %v1905_v58 }
 0x66e   : > { %v1911_v43 = vadd.f32 %v2735_v20, %v1907_v2 }
 0x670   : > { %v3373_v52 = vadd.f32 %v2637_v40, %v1911_v43 }
 0x672   : > { %v1931_v59 = vsel %vm867_vm1, %v3373_v52, 0.0 }
 0x673   : > { %1932 = vadd.xlane.f32.xlu0 %v1931_v59 }
 0x6a7   : > { %v1924_v33 = vpop.xlane.xlu1 %1923 }
 0x6a8   : > { %v1934_v10 = vmul.f32 %v1924_v33, %v3033_v60 }
 0x6aa   : > { %v1938_v22 = vsub.f32 %v3352_v36, %v1934_v10 }
 0x6ac   : > { %v1942_v24 = vmul.f32 %v1938_v22, %v1938_v22 }
 0x6ae   : > { %v1946_v26 = vsel %vm867_vm1, %v1942_v24, 0.0 }
 0x6af   : > { %v1927_v27 = vpop.xlane.xlu2 %1926  ;;  %1947 = vadd.xlane.f32.xlu1 %v1946_v26 }
 0x6b0   : > { %v1935_v29 = vmul.f32 %v1927_v27, %v3033_v60 }
 0x6b2   : > { %v1939_v30 = vsub.f32 %v3357_v53, %v1935_v29 }
 0x6b4   : > { %v1943_v31 = vmul.f32 %v1939_v30, %v1939_v30 }
 0x6b6   : > { %v1949_v32 = vsel %vm867_vm1, %v1943_v31, 0.0 }
 0x6b7   : > { %1950 = vadd.xlane.f32.xlu0 %v1949_v32 }
 0x6de   : > { %v1930_v34 = vpop.xlane.xlu1 %1929 }
 0x6df   : > { %v1936_v37 = vmul.f32 %v1930_v34, %v3033_v60 }
 0x6e1   : > { %v3385_v54 = vsub.f32 %v3368_v15, %v1936_v37 }
 0x6e3   : > { %v1944_v38 = vmul.f32 %v3385_v54, %v3385_v54 }
 0x6e5   : > { %v1952_v18 = vsel %vm867_vm1, %v1944_v38, 0.0 }
 0x6e6   : > { %1953 = vadd.xlane.f32.xlu1 %v1952_v18  ;;  %v1933_v39 = vpop.xlane.xlu0 %1932 }
 0x6e7   : > { %v1937_v40 = vmul.f32 %v1933_v39, %v3033_v60 }
 0x6e9   : > { %v3392_v44 = vsub.f32 %v3373_v52, %v1937_v40 }
 0x6eb   : > { %v1945_v45 = vmul.f32 %v3392_v44, %v3392_v44 }
 0x6ed   : > { %v1955_v46 = vsel %vm867_vm1, %v1945_v45, 0.0 }
 0x6ee   : > { %1956 = vadd.xlane.f32.xlu0 %v1955_v46 }
 0x722   : > { %v1948_v16 = vpop.xlane.xlu1 %1947 }
 0x723   : > { %v1958_v48 = vmul.f32 %v1948_v16, %v3033_v60  ;;  %v2548_v16 = vld [vmem:[%s2945_s22 + $0x10] sm:$0xff] }
 0x724   : > { %2157 = vmatpush.bf16.msrb.mxu3 %v2548_v16 }
 0x725   : > { %v1962_v17 = vadd.f32 1e-05, %v1958_v48  ;;  %v2640_v48 = vld [vmem:[%s645_s5] ss:$0 sm:$0xff] }
 0x727   : > { %2716 = vrsqrt.f32 %v1962_v17  ;;  %vm1972_vm5 = vweird.f32 %v1962_v17 }
 0x72a   : > { %v1951_v50 = vpop.xlane.xlu0 %1950 }
 0x72b   : > { %v1959_v25 = vmul.f32 %v1951_v50, %v3033_v60 }
 0x72d   : > { %v2717_v35 = vpop.eup %2716  ;;  %v1963_v51 = vadd.f32 1e-05, %v1959_v25 }
 0x72e   : > { %v1967_v8 = vmul.f32 %v2717_v35, %v1962_v17  ;;  %vm1973_vm4 = vweird.f32 %v2717_v35 }
 0x72f   : > { %2718 = vrsqrt.f32 %v1963_v51  ;;  %vm1974_vm6 = vmor %vm1972_vm5, %vm1973_vm4  ;;  %vm1982_vm8 = vweird.f32 %v1963_v51 }
 0x730   : > { %v1968_v56 = vmul.f32 %v2717_v35, %v1967_v8 }
 0x732   : > { %v1969_v6 = vmul.f32 0.5, %v1968_v56 }
 0x734   : > { %v1970_v47 = vsub.f32 1.5, %v1969_v6 }
 0x735   : > { %v2719_v49 = vpop.eup %2718 }
 0x736   : > { %v1971_v61 = vmul.f32 %v2717_v35, %v1970_v47  ;;  %v1977_v63 = vmul.f32 %v2719_v49, %v1963_v51  ;;  %vm1983_vm7 = vweird.f32 %v2719_v49 }
 0x737   : > { %vm1984_vm9 = vmor %vm1982_vm8, %vm1983_vm7 }
 0x738   : > { %v1978_v55 = vmul.f32 %v2719_v49, %v1977_v63  ;;  %v1975_v42 = vsel %vm1974_vm6, %v2717_v35, %v1971_v61 }
 0x739   : > { %v2006_v4 = vmul.f32 %v1975_v42, %v1938_v22 }
 0x73a   : > { %v1979_v19 = vmul.f32 0.5, %v1978_v55 }
 0x73b   : > { %v2013_v12 = vmul.f32 %v2638_v3, %v2006_v4 }
 0x73c   : > { %v1980_v0 = vsub.f32 1.5, %v1979_v19 }
 0x73d   : > { %v2020_v57 = vadd.f32 %v2639_v9, %v2013_v12 }
 0x73e   : > { %v1981_v21 = vmul.f32 %v2719_v49, %v1980_v0 }
 0x740   : > { %v1985_v5 = vsel %vm1984_vm9, %v2719_v49, %v1981_v21 }
 0x741   : > { %v2007_v13 = vmul.f32 %v1985_v5, %v1939_v30 }
 0x743   : > { %v2014_v28 = vmul.f32 %v2638_v3, %v2007_v13 }
 0x745   : > { %v2021_v7 = vadd.f32 %v2639_v9, %v2014_v28 }
 0x747   : > { %v2024_v41 = vpack.c.bf16 %v2021_v7, %v2020_v57 }
 0x749   : > { %2494 = vmatmul.msk.bf16.vlgmr.msrb.gmra.mxu2 %vm867_vm1, %v2024_v41 }
 0x759   : > { %v1954_v58 = vpop.xlane.xlu1 %1953 }
 0x75a   : > { %v1960_v1 = vmul.f32 %v1954_v58, %v3033_v60 }
 0x75c   : > { %v1964_v62 = vadd.f32 1e-05, %v1960_v1 }
 0x75e   : > { %2720 = vrsqrt.f32 %v1964_v62  ;;  %vm1992_vm11 = vweird.f32 %v1964_v62 }
 0x761   : > { %v1957_v11 = vpop.xlane.xlu0 %1956 }
 0x762   : > { %v1961_v2 = vmul.f32 %v1957_v11, %v3033_v60 }
 0x764   : > { %v2721_v20 = vpop.eup %2720  ;;  %v1965_v43 = vadd.f32 1e-05, %v1961_v2 }
 0x765   : > { %v1987_v59 = vmul.f32 %v2721_v20, %v1964_v62  ;;  %vm1993_vm10 = vweird.f32 %v2721_v20 }
 0x766   : > { %2722 = vrsqrt.f32 %v1965_v43  ;;  %vm1994_vm12 = vmor %vm1992_vm11, %vm1993_vm10  ;;  %vm2002_vm14 = vweird.f32 %v1965_v43 }
 0x767   : > { %v1988_v33 = vmul.f32 %v2721_v20, %v1987_v59 }
 0x769   : > { %v1989_v10 = vmul.f32 0.5, %v1988_v33 }
 0x76b   : > { %v1990_v22 = vsub.f32 1.5, %v1989_v10 }
 0x76c   : > { %v2723_v24 = vpop.eup %2722 }
 0x76d   : > { %v1991_v26 = vmul.f32 %v2721_v20, %v1990_v22  ;;  %v1997_v27 = vmul.f32 %v2723_v24, %v1965_v43  ;;  %vm2003_vm13 = vweird.f32 %v2723_v24 }
 0x76e   : > { %vm2004_vm15 = vmor %vm2002_vm14, %vm2003_vm13 }
 0x76f   : > { %v1998_v29 = vmul.f32 %v2723_v24, %v1997_v27  ;;  %v1995_v30 = vsel %vm1994_vm12, %v2721_v20, %v1991_v26 }
 0x770   : > { %v2008_v60 = vmul.f32 %v1995_v30, %v3385_v54  ;;  %v2547_v54 = vld [vmem:[%s2945_s22 + $0x8] sm:$0xff] }
 0x771   : > { %v1999_v31 = vmul.f32 0.5, %v1998_v29  ;;  %2158 = vmatpush.bf16.msrb.mxu3 %v2547_v54 }
 0x772   : > { %v2015_v18 = vmul.f32 %v2638_v3, %v2008_v60  ;;  %v2641_v60 = vld [vmem:[%s653_s7] ss:$0 sm:$0xff]  ;;  %s2798_s7 = smov [#allocation2]  }
 0x773   : > { %v2000_v32 = vsub.f32 1.5, %v1999_v31  ;;  %s2188_s18 = sshll.u32 %s2798_s7, 4  ;;  %s2189_s18 = int_to_ptr.vmem [resolvable:$true] %s2188_s18 }
 0x774   : > { %v2022_v40 = vadd.f32 %v2639_v9, %v2015_v18 }
 0x775   : > { %v2001_v34 = vmul.f32 %v2723_v24, %v2000_v32 }
 0x777   : > { %v2005_v37 = vsel %vm2004_vm15, %v2723_v24, %v2001_v34 }
 0x778   : > { %v2009_v38 = vmul.f32 %v2005_v37, %v3392_v44  ;;  %v2546_v44 = vld [vmem:[%s2945_s22] sm:$0xff] }
 0x779   : > { %2159 = vmatpush.bf16.msrb.mxu3 %v2546_v44 }
 0x77a   : > { %v2016_v39 = vmul.f32 %v2638_v3, %v2009_v38 }
 0x77c   : > { %v2023_v45 = vadd.f32 %v2639_v9, %v2016_v39 }
 0x77e   : > { %v2025_v46 = vpack.c.bf16 %v2023_v45, %v2022_v40 }
 0x780   : > { %2495 = vmatmul.msk.bf16.gmra.mxu2 %vm867_vm1, %v2025_v46 }
 0x7cc   : > { %v2061_v17 = vpop.f32.mrf.mxu2 }
 0x7cd   : > { %v2062_v14 = vadd.f32 %v2640_v48, %v2061_v17 }
 0x7cf   : > { %v2071_v50 = vmul.f32 %v2062_v14, %v2062_v14 }
 0x7d1   : > { %v2075_v25 = vmul.f32 %v2071_v50, %v2062_v14 }
 0x7d3   : > { %v2079_v35 = vmul.f32 0.044715, %v2075_v25 }
 0x7d4   : > { %v2063_v51 = vpop.f32.mrf.mxu2 }
 0x7d5   : > { %v2083_v8 = vadd.f32 %v2079_v35, %v2062_v14  ;;  %v2064_v56 = vadd.f32 %v2640_v48, %v2063_v51 }
 0x7d7   : > { %v2087_v6 = vmul.f32 0.7978846, %v2083_v8  ;;  %v2072_v47 = vmul.f32 %v2064_v56, %v2064_v56 }
 0x7d9   : > { %v2076_v49 = vmul.f32 %v2072_v47, %v2064_v56  ;;  %2724 = vtanh.f32 %v2087_v6 }
 0x7db   : > { %v2080_v61 = vmul.f32 0.044715, %v2076_v49 }
 0x7dd   : > { %v2084_v63 = vadd.f32 %v2080_v61, %v2064_v56 }
 0x7df   : > { %v2088_v55 = vmul.f32 0.7978846, %v2084_v63  ;;  %v2725_v42 = vpop.eup %2724 }
 0x7e0   : > { %v2095_v19 = vadd.f32 1.0, %v2725_v42 }
 0x7e1   : > { %2726 = vtanh.f32 %v2088_v55 }
 0x7e2   : > { %v2099_v3 = vmul.f32 0.5, %v2095_v19 }
 0x7e4   : > { %v2103_v5 = vmul.f32 %v2099_v3, %v2062_v14 }
 0x7e7   : > { %v2727_v0 = vpop.eup %2726 }
 0x7e8   : > { %v2096_v4 = vadd.f32 1.0, %v2727_v0 }
 0x7ea   : > { %v2100_v21 = vmul.f32 0.5, %v2096_v4 }
 0x7ec   : > { %v2104_v9 = vmul.f32 %v2100_v21, %v2064_v56 }
 0x7ee   : > { %v2107_v12 = vpack.c.bf16 %v2104_v9, %v2103_v5 }
 0x7f0   : > { %2512 = vmatmul.msk.bf16.vlgmr.msrb.gmra.mxu3 %vm2145_vm0, %v2107_v12 }
 0x803   : > { %v2066_v13 = vpop.f32.mrf.mxu2 }
 0x804   : > { %v2067_v28 = vadd.f32 %v2640_v48, %v2066_v13 }
 0x806   : > { %v2073_v57 = vmul.f32 %v2067_v28, %v2067_v28 }
 0x808   : > { %v2077_v7 = vmul.f32 %v2073_v57, %v2067_v28 }
 0x80a   : > { %v2081_v41 = vmul.f32 0.044715, %v2077_v7 }
 0x80b   : > { %v2068_v58 = vpop.f32.mrf.mxu2 }
 0x80c   : > { %v2085_v1 = vadd.f32 %v2081_v41, %v2067_v28  ;;  %v2069_v62 = vadd.f32 %v2640_v48, %v2068_v58 }
 0x80e   : > { %v2089_v11 = vmul.f32 0.7978846, %v2085_v1  ;;  %v2074_v2 = vmul.f32 %v2069_v62, %v2069_v62 }
 0x810   : > { %v2078_v20 = vmul.f32 %v2074_v2, %v2069_v62  ;;  %2728 = vtanh.f32 %v2089_v11 }
 0x812   : > { %v2082_v43 = vmul.f32 0.044715, %v2078_v20 }
 0x814   : > { %v2086_v59 = vadd.f32 %v2082_v43, %v2069_v62 }
 0x816   : > { %v2090_v33 = vmul.f32 0.7978846, %v2086_v59  ;;  %v2729_v10 = vpop.eup %2728 }
 0x817   : > { %v2097_v22 = vadd.f32 1.0, %v2729_v10 }
 0x818   : > { %2730 = vtanh.f32 %v2090_v33 }
 0x819   : > { %v2101_v27 = vmul.f32 0.5, %v2097_v22 }
 0x81b   : > { %v2105_v30 = vmul.f32 %v2101_v27, %v2067_v28 }
 0x81e   : > { %v2731_v24 = vpop.eup %2730 }
 0x81f   : > { %v2098_v26 = vadd.f32 1.0, %v2731_v24 }
 0x821   : > { %v2102_v29 = vmul.f32 0.5, %v2098_v26 }
 0x823   : > { %v2106_v31 = vmul.f32 %v2102_v29, %v2069_v62 }
 0x825   : > { %v2108_v32 = vpack.c.bf16 %v2106_v31, %v2105_v30 }
 0x827   : > { %2513 = vmatmul.msk.bf16.gmra.mxu3 %vm2145_vm0, %v2108_v32 }
 0x873   : > { %v2161_v34 = vpop.f32.mrf.mxu3 }
 0x874   : > { %v2162_v37 = vadd.f32 %v2641_v60, %v2161_v34 }
 0x876   : > { %v2171_v38 = vadd.f32 %v2162_v37, %v3352_v36 }
 0x878   : > { %2175 = vst.msk [vmem:[#allocation2] sm:$0xff] %vm867_vm1, %v2171_v38 }
 0x87b   : > { %v2163_v18 = vpop.f32.mrf.mxu3 }
 0x87c   : > { %v2164_v39 = vadd.f32 %v2641_v60, %v2163_v18 }
 0x87e   : > { %v2172_v40 = vadd.f32 %v2164_v39, %v3357_v53 }
 0x880   : > { %2176 = vst.msk [vmem:[#allocation2 + $0x8] sm:$0xff] %vm867_vm1, %v2172_v40 }
 0x8aa   : > { %v2166_v45 = vpop.f32.mrf.mxu3 }
 0x8ab   : > { %v2167_v46 = vadd.f32 %v2641_v60, %v2166_v45 }
 0x8ad   : > { %v2173_v23 = vadd.f32 %v2167_v46, %v3368_v15 }
 0x8af   : > { %2177 = vst.msk [vmem:[#allocation2 + $0x10] sm:$0xff] %vm867_vm1, %v2173_v23 }
 0x8b2   : > { %v2168_v36 = vpop.f32.mrf.mxu3 }
 0x8b3   : > { %v2169_v16 = vadd.f32 %v2641_v60, %v2168_v36 }
 0x8b5   : > { %v2174_v53 = vadd.f32 %v2169_v16, %v3373_v52 }
 0x8b7   : > { %2178 = vst.msk [vmem:[#allocation2 + $0x18] sm:$0xff] %vm867_vm1, %v2174_v53 }
 0x8b8   : > { %2567 = dma.vmem_to_hbm [thread:$0]  (%p2570_p6), %s2189_s18, 512, %s2191_s30, [#allocation3], %s2799_s14, %s2799_s14, %s2800_s15  }
 0x8b9   : > { %2777 = dma.done.wait (%p2570_p6), [#allocation3], 512  }
 0x8ba   : > { %2779 = vsyncadd (%p2570_p6), [#allocation3], 4294966784 }
 0x8bb PF: > { %s3493_s21 = sld [smem:[#allocation6_spill]] }
 0x8bc   : > { %s3494_s29 = sld [smem:[#allocation5_spill]] }
 0x8bd   : > { %s3495_s30 = sld [smem:[#allocation7_spill]] }
 0x8c1   : > { %s25_s15 = sadd.s32 1, %s3493_s21  }
 0x8c2   : > { %p22_p7 = scmp.ge.s32.totalorder %s25_s15, 4  }
 0x8c4   :  { %24 = sbr.rel (!%p22_p7) target bundleno = 8 (0x8), region = 141 }
 0x8c9   :  { %2207 = vsyncpa [#allocation3], 1 }
 0x8ca   :  { %2209 = vsyncpa [#allocation3 + $0x1], 1 }

</bundles_post_ra>
